<compile_context>
chip_gen: v7x
topology: tpu7x:2x2x1
jax: 0.10.0
libtpu: 0.0.40
codegen_flags: <defaults>
</compile_context>

<pallas_src>
import functools

import jax
import jax.numpy as jnp
from jax.experimental import pallas as pl
from jax.experimental.pallas import tpu as pltpu


def postnet_fused_kernel(x_ref, w_ref, bias_ref, o_ref, buf0, buf1,
                         *, T, K, L, pad, top):
    """All postnet layers for one batch element; activations resident in VMEM.

    x_ref:    (1, T, C)       bf16 input (channels zero-padded to C lanes)
    w_ref:    (L, K, C, C)    bf16 conv weights, BN scale pre-folded, zero-padded
    bias_ref: (L, 1, C)       f32 folded BN shift (0 on padded channels)
    o_ref:    (1, T, C)       f32 output
    buf0/1:   (rows, C)       bf16 ping-pong activation scratch with time halos;
                              interior rows are [top, top + T)
    """
    C = buf0.shape[1]
    rows = buf0.shape[0]

    # --- Halo maintenance -------------------------------------------------------
    # Only the halo rows are zeroed; the interior rows are fully overwritten below
    # and by every layer's store, so full-buffer zeroing would be pure VPU/vst waste.
    # Invariant relied upon: nothing ever writes outside rows [top, top + T).
    zero_top = jnp.zeros((top, C), dtype=buf0.dtype)
    for buf in (buf0, buf1):
        buf[0:top, :] = zero_top
        if rows > top + T:  # static
            buf[top + T:, :] = jnp.zeros((rows - top - T, C), dtype=buf0.dtype)

    # Load this batch element into the (vreg-aligned) interior rows of buf0.
    buf0[pl.ds(top, T), :] = x_ref[0]

    bufs = (buf0, buf1)
    for layer in range(L):            # small static L -> fully unrolled at trace time
        src = bufs[layer % 2]
        dst = bufs[(layer + 1) % 2]

        # K accumulating per-tap MXU matmuls, f32 accumulation.  Tap k reads rows
        # [top - pad + k, top - pad + k + T): zero halos give "same" padding for free.
        acc = jnp.dot(src[pl.ds(top - pad, T), :], w_ref[layer, 0],
                      preferred_element_type=jnp.float32)
        for k in range(1, K):
            acc = acc + jnp.dot(src[pl.ds(top - pad + k, T), :], w_ref[layer, k],
                                preferred_element_type=jnp.float32)

        # BatchNorm (running stats): scale is folded into the weights; add the shift.
        y = acc + bias_ref[layer]

        if layer != L - 1:
            # Aligned, unmasked writeback of exactly the interior rows.
            dst[pl.ds(top, T), :] = jnp.tanh(y).astype(dst.dtype)
        else:
            o_ref[...] = y[None].astype(o_ref.dtype)      # last layer: no tanh


def init_postnet_params(key, odim, n_chans, n_layers, n_filts):
    """Deterministic synthetic parameters (conv weights + BN running stats)."""
    eps = 1e-5
    params = []
    for layer in range(n_layers):
        ichans = odim if layer == 0 else n_chans
        ochans = odim if layer == n_layers - 1 else n_chans
        key, kw, kg, kb, km, kv = jax.random.split(key, 6)
        # PyTorch Conv1d weight layout (Cout, Cin, K) -> tap-major (K, Cin, Cout).
        w = 0.1 * jax.random.normal(kw, (ochans, ichans, n_filts), jnp.float32)
        w_kic = jnp.transpose(w, (2, 1, 0))
        gamma = 1.0 + 0.1 * jax.random.normal(kg, (ochans,), jnp.float32)
        beta = 0.1 * jax.random.normal(kb, (ochans,), jnp.float32)
        running_mean = 0.05 * jax.random.normal(km, (ochans,), jnp.float32)
        running_var = 1.0 + 0.1 * jax.random.uniform(kv, (ochans,), jnp.float32)
        scale = gamma / jnp.sqrt(running_var + eps)
        shift = beta - running_mean * scale
        params.append(dict(w=w_kic, scale=scale[None, :], bias=shift[None, :]))
    return params


def pack_postnet_params(params, cmax):
    """Fold BN scale into the conv weights, pad channels to cmax, stack layers.

    Padded weight rows/cols and biases are zero, so padded lanes stay exactly zero
    (tanh(0) = 0) through every layer and never leak into real channels.
    """
    K = params[0]["w"].shape[0]
    w_stack, b_stack = [], []
    for p in params:
        _, cin, cout = p["w"].shape
        # y = scale * (W (*) x) + shift  ==  (scale * W) (*) x + shift
        w_folded = p["w"] * p["scale"][0][None, None, :]
        w = jnp.zeros((K, cmax, cmax), jnp.float32).at[:, :cin, :cout].set(w_folded)
        b = jnp.zeros((1, cmax), jnp.float32).at[:, :cout].set(p["bias"])
        w_stack.append(w)
        b_stack.append(b)
    return (jnp.stack(w_stack).astype(jnp.bfloat16),   # (L, K, cmax, cmax) bf16
            jnp.stack(b_stack))                        # (L, 1, cmax)      f32


def postnet_forward(xs, w_packed, bias_packed, *, n_filts, cmax):
    """xs: (B, odim, Tmax) -> (B, odim, Tmax). Inference mode (dropout = identity)."""
    B, odim, T = xs.shape
    K = n_filts
    pad = (K - 1) // 2
    L = w_packed.shape[0]

    # bf16 packs 16 sublanes per vreg: put the interior at a 16-row-aligned offset
    # and round the scratch height up to a multiple of 16.
    top = 16
    assert pad <= top
    rows = ((top + T + pad + 15) // 16) * 16

    # Single cheap layout pass: NCW -> NWC, channel-pad to the lane-dense width, bf16.
    x = jnp.transpose(xs, (0, 2, 1))                            # (B, T, odim)
    x = jnp.pad(x, ((0, 0), (0, 0), (0, cmax - odim)))          # (B, T, cmax)
    x = x.astype(jnp.bfloat16)

    # Scoped-VMEM budget from the actual block + scratch sizes (never below default).
    vmem_bytes = (
        2 * T * cmax * 2                  # input block (double-buffered)
        + 2 * L * K * cmax * cmax * 2     # weights (constant index map)
        + 2 * L * cmax * 4                # bias
        + 2 * T * cmax * 4                # output block
        + 2 * rows * cmax * 2             # ping-pong activation scratch
    )
    vmem_limit = min(max(2 * vmem_bytes + (8 << 20), 32 << 20), 128 << 20)

    cost = pl.CostEstimate(
        flops=2 * B * L * T * K * cmax * cmax,
        transcendentals=B * (L - 1) * T * cmax,
        bytes_accessed=int(x.size) * 2 + int(w_packed.size) * 2
                       + int(bias_packed.size) * 4 + B * T * cmax * 4,
    )

    kern = functools.partial(postnet_fused_kernel, T=T, K=K, L=L, pad=pad, top=top)
    out = pl.pallas_call(
        kern,
        out_shape=jax.ShapeDtypeStruct((B, T, cmax), jnp.float32),
        grid=(B,),
        in_specs=[
            pl.BlockSpec((1, T, cmax), lambda b: (b, 0, 0)),
            pl.BlockSpec((L, K, cmax, cmax), lambda b: (0, 0, 0, 0)),
            pl.BlockSpec((L, 1, cmax), lambda b: (0, 0, 0)),
        ],
        out_specs=pl.BlockSpec((1, T, cmax), lambda b: (b, 0, 0)),
        scratch_shapes=[
            pltpu.VMEM((rows, cmax), jnp.bfloat16),
            pltpu.VMEM((rows, cmax), jnp.bfloat16),
        ],
        compiler_params=pltpu.CompilerParams(
            dimension_semantics=("parallel",),      # v7x: 2 TCs split the batch
            vmem_limit_bytes=int(vmem_limit),
        ),
        cost_estimate=cost,
    )(x, w_packed, bias_packed)

    out = out[:, :, :odim]                                      # drop padded lanes
    return jnp.transpose(out, (0, 2, 1))                        # back to (B, odim, T)


def postnet_reference(xs, params, n_filts):
    """Pure-JAX f32 reference (Conv1d no-bias -> BN(running stats) -> Tanh, no last Tanh)."""
    pad = (n_filts - 1) // 2
    L = len(params)
    h = xs
    for i, p in enumerate(params):
        w = p["w"]                                              # (K, Cin, Cout)
        Tloc = h.shape[2]
        hp = jnp.pad(h, ((0, 0), (0, 0), (pad, pad)))
        out = jnp.zeros((h.shape[0], w.shape[2], Tloc), jnp.float32)
        for k in range(n_filts):
            out = out + jnp.einsum("bct,cd->bdt", hp[:, :, k:k + Tloc], w[k])
        out = out * p["scale"][0][None, :, None] + p["bias"][0][None, :, None]
        if i != L - 1:
            out = jnp.tanh(out)
        h = out
    return h


if __name__ == "__main__":
    # Small shapes: batch=2, odim=8 (mel dims), T=16, n_chans=32, 5 layers, filter 5.
    B, ODIM, T = 2, 8, 16
    N_CHANS, N_LAYERS, N_FILTS = 32, 5, 5
    CMAX = ((max(ODIM, N_CHANS) + 127) // 128) * 128            # lane-dense width

    key = jax.random.PRNGKey(0)
    key, kx = jax.random.split(key)
    xs = jax.random.normal(kx, (B, ODIM, T), jnp.float32)       # (B, odim, Tmax)

    params = init_postnet_params(key, ODIM, N_CHANS, N_LAYERS, N_FILTS)
    w_packed, bias_packed = pack_postnet_params(params, CMAX)

    out = postnet_forward(xs, w_packed, bias_packed, n_filts=N_FILTS, cmax=CMAX)
    out = jax.block_until_ready(out)
    assert out.shape == (B, ODIM, T), out.shape

    # bf16 weights/activations vs f32 reference: expect ~1e-2 deviation after 5 layers.
    ref = postnet_reference(xs, params, N_FILTS)
    max_err = float(jnp.max(jnp.abs(out - ref)))
    assert max_err < 0.2, f"max abs err vs f32 reference too large: {max_err}"

    print("KERNEL_OK")
</pallas_src>

<mosaic_0001>
module attributes {stable_mosaic.version = 11 : i64} {
  func.func @postnet_fused_kernel(%arg0: i32, %arg1: memref<1x16x128xbf16, #tpu.memory_space<vmem>>, %arg2: memref<5x5x128x128xbf16, #tpu.memory_space<vmem>>, %arg3: memref<5x1x128xf32, #tpu.memory_space<vmem>>, %arg4: memref<1x16x128xf32, #tpu.memory_space<vmem>>, %arg5: memref<48x128xbf16, #tpu.memory_space<vmem>>, %arg6: memref<48x128xbf16, #tpu.memory_space<vmem>>) attributes {dimension_semantics = [#tpu.dimension_semantics<parallel>], iteration_bounds = array<i64: 2>, scalar_prefetch = 0 : i64, scratch_operands = 2 : i64, tpu.core_type = #tpu.core_type<tc>, window_params = [{transform_indices = @transform_0, window_bounds = array<i64: 1, 16, 128>}, {pipeline_mode = #tpu.pipeline_mode<synchronous>, transform_indices = @transform_1, window_bounds = array<i64: 5, 5, 128, 128>}, {pipeline_mode = #tpu.pipeline_mode<synchronous>, transform_indices = @transform_2, window_bounds = array<i64: 5, 1, 128>}, {transform_indices = @transform_3, window_bounds = array<i64: 1, 16, 128>}]} {
    %cst = arith.constant 0.000000e+00 : bf16
    %0 = vector.broadcast %cst : bf16 to vector<16x128xbf16>
    %c0 = arith.constant 0 : index
    %c0_0 = arith.constant 0 : index
    %1 = vector.load %arg5[%c0, %c0_0] : memref<48x128xbf16, #tpu.memory_space<vmem>>, vector<16x128xbf16>
    tpu.vector_store %arg5[%c0, %c0_0], %0 {strides = array<i32>} : memref<48x128xbf16, #tpu.memory_space<vmem>>, vector<16x128xbf16>,
    %cst_1 = arith.constant 0.000000e+00 : bf16
    %2 = vector.broadcast %cst_1 : bf16 to vector<16x128xbf16>
    %c32 = arith.constant 32 : index
    %c0_2 = arith.constant 0 : index
    %3 = vector.load %arg5[%c32, %c0_2] : memref<48x128xbf16, #tpu.memory_space<vmem>>, vector<16x128xbf16>
    tpu.vector_store %arg5[%c32, %c0_2], %2 {strides = array<i32>} : memref<48x128xbf16, #tpu.memory_space<vmem>>, vector<16x128xbf16>,
    %c0_3 = arith.constant 0 : index
    %c0_4 = arith.constant 0 : index
    %4 = vector.load %arg6[%c0_3, %c0_4] : memref<48x128xbf16, #tpu.memory_space<vmem>>, vector<16x128xbf16>
    tpu.vector_store %arg6[%c0_3, %c0_4], %0 {strides = array<i32>} : memref<48x128xbf16, #tpu.memory_space<vmem>>, vector<16x128xbf16>,
    %cst_5 = arith.constant 0.000000e+00 : bf16
    %5 = vector.broadcast %cst_5 : bf16 to vector<16x128xbf16>
    %c32_6 = arith.constant 32 : index
    %c0_7 = arith.constant 0 : index
    %6 = vector.load %arg6[%c32_6, %c0_7] : memref<48x128xbf16, #tpu.memory_space<vmem>>, vector<16x128xbf16>
    tpu.vector_store %arg6[%c32_6, %c0_7], %5 {strides = array<i32>} : memref<48x128xbf16, #tpu.memory_space<vmem>>, vector<16x128xbf16>,
    %c0_8 = arith.constant 0 : index
    %c0_9 = arith.constant 0 : index
    %c0_10 = arith.constant 0 : index
    %7 = vector.load %arg1[%c0_8, %c0_9, %c0_10] : memref<1x16x128xbf16, #tpu.memory_space<vmem>>, vector<1x16x128xbf16>
    %8 = vector.shape_cast %7 : vector<1x16x128xbf16> to vector<16x128xbf16>
    %c16 = arith.constant 16 : index
    %c0_11 = arith.constant 0 : index
    %9 = vector.load %arg5[%c16, %c0_11] : memref<48x128xbf16, #tpu.memory_space<vmem>>, vector<16x128xbf16>
    tpu.vector_store %arg5[%c16, %c0_11], %8 {strides = array<i32>} : memref<48x128xbf16, #tpu.memory_space<vmem>>, vector<16x128xbf16>,
    %c14 = arith.constant 14 : index
    %c0_12 = arith.constant 0 : index
    %10 = vector.load %arg5[%c14, %c0_12] : memref<48x128xbf16, #tpu.memory_space<vmem>>, vector<16x128xbf16>
    %c0_13 = arith.constant 0 : index
    %c0_14 = arith.constant 0 : index
    %c0_15 = arith.constant 0 : index
    %c0_16 = arith.constant 0 : index
    %11 = vector.load %arg2[%c0_13, %c0_14, %c0_15, %c0_16] : memref<5x5x128x128xbf16, #tpu.memory_space<vmem>>, vector<1x1x128x128xbf16>
    %12 = vector.shape_cast %11 : vector<1x1x128x128xbf16> to vector<128x128xbf16>
    %cst_17 = arith.constant dense<0.000000e+00> : vector<16x128xf32>
    %13 = tpu.matmul %10, %12, %cst_17 {dimension_numbers = #tpu.dot_dimension_numbers<[1], [0], [0], [1], [0, 0, 1, 1], [], []>} : vector<16x128xbf16>, vector<128x128xbf16>, vector<16x128xf32> -> vector<16x128xf32>
    %c15 = arith.constant 15 : index
    %c0_18 = arith.constant 0 : index
    %14 = vector.load %arg5[%c15, %c0_18] : memref<48x128xbf16, #tpu.memory_space<vmem>>, vector<16x128xbf16>
    %c0_19 = arith.constant 0 : index
    %c1 = arith.constant 1 : index
    %c0_20 = arith.constant 0 : index
    %c0_21 = arith.constant 0 : index
    %15 = vector.load %arg2[%c0_19, %c1, %c0_20, %c0_21] : memref<5x5x128x128xbf16, #tpu.memory_space<vmem>>, vector<1x1x128x128xbf16>
    %16 = vector.shape_cast %15 : vector<1x1x128x128xbf16> to vector<128x128xbf16>
    %cst_22 = arith.constant dense<0.000000e+00> : vector<16x128xf32>
    %17 = tpu.matmul %14, %16, %cst_22 {dimension_numbers = #tpu.dot_dimension_numbers<[1], [0], [0], [1], [0, 0, 1, 1], [], []>} : vector<16x128xbf16>, vector<128x128xbf16>, vector<16x128xf32> -> vector<16x128xf32>
    %18 = arith.addf %13, %17 : vector<16x128xf32>
    %c16_23 = arith.constant 16 : index
    %c0_24 = arith.constant 0 : index
    %19 = vector.load %arg5[%c16_23, %c0_24] : memref<48x128xbf16, #tpu.memory_space<vmem>>, vector<16x128xbf16>
    %c0_25 = arith.constant 0 : index
    %c2 = arith.constant 2 : index
    %c0_26 = arith.constant 0 : index
    %c0_27 = arith.constant 0 : index
    %20 = vector.load %arg2[%c0_25, %c2, %c0_26, %c0_27] : memref<5x5x128x128xbf16, #tpu.memory_space<vmem>>, vector<1x1x128x128xbf16>
    %21 = vector.shape_cast %20 : vector<1x1x128x128xbf16> to vector<128x128xbf16>
    %cst_28 = arith.constant dense<0.000000e+00> : vector<16x128xf32>
    %22 = tpu.matmul %19, %21, %cst_28 {dimension_numbers = #tpu.dot_dimension_numbers<[1], [0], [0], [1], [0, 0, 1, 1], [], []>} : vector<16x128xbf16>, vector<128x128xbf16>, vector<16x128xf32> -> vector<16x128xf32>
    %23 = arith.addf %18, %22 : vector<16x128xf32>
    %c17 = arith.constant 17 : index
    %c0_29 = arith.constant 0 : index
    %24 = vector.load %arg5[%c17, %c0_29] : memref<48x128xbf16, #tpu.memory_space<vmem>>, vector<16x128xbf16>
    %c0_30 = arith.constant 0 : index
    %c3 = arith.constant 3 : index
    %c0_31 = arith.constant 0 : index
    %c0_32 = arith.constant 0 : index
    %25 = vector.load %arg2[%c0_30, %c3, %c0_31, %c0_32] : memref<5x5x128x128xbf16, #tpu.memory_space<vmem>>, vector<1x1x128x128xbf16>
    %26 = vector.shape_cast %25 : vector<1x1x128x128xbf16> to vector<128x128xbf16>
    %cst_33 = arith.constant dense<0.000000e+00> : vector<16x128xf32>
    %27 = tpu.matmul %24, %26, %cst_33 {dimension_numbers = #tpu.dot_dimension_numbers<[1], [0], [0], [1], [0, 0, 1, 1], [], []>} : vector<16x128xbf16>, vector<128x128xbf16>, vector<16x128xf32> -> vector<16x128xf32>
    %28 = arith.addf %23, %27 : vector<16x128xf32>
    %c18 = arith.constant 18 : index
    %c0_34 = arith.constant 0 : index
    %29 = vector.load %arg5[%c18, %c0_34] : memref<48x128xbf16, #tpu.memory_space<vmem>>, vector<16x128xbf16>
    %c0_35 = arith.constant 0 : index
    %c4 = arith.constant 4 : index
    %c0_36 = arith.constant 0 : index
    %c0_37 = arith.constant 0 : index
    %30 = vector.load %arg2[%c0_35, %c4, %c0_36, %c0_37] : memref<5x5x128x128xbf16, #tpu.memory_space<vmem>>, vector<1x1x128x128xbf16>
    %31 = vector.shape_cast %30 : vector<1x1x128x128xbf16> to vector<128x128xbf16>
    %cst_38 = arith.constant dense<0.000000e+00> : vector<16x128xf32>
    %32 = tpu.matmul %29, %31, %cst_38 {dimension_numbers = #tpu.dot_dimension_numbers<[1], [0], [0], [1], [0, 0, 1, 1], [], []>} : vector<16x128xbf16>, vector<128x128xbf16>, vector<16x128xf32> -> vector<16x128xf32>
    %33 = arith.addf %28, %32 : vector<16x128xf32>
    %c0_39 = arith.constant 0 : index
    %c0_40 = arith.constant 0 : index
    %c0_41 = arith.constant 0 : index
    %34 = vector.load %arg3[%c0_39, %c0_40, %c0_41] : memref<5x1x128xf32, #tpu.memory_space<vmem>>, vector<1x1x128xf32>
    %35 = vector.shape_cast %34 : vector<1x1x128xf32> to vector<1x128xf32>
    %36 = vector.broadcast %35 : vector<1x128xf32> to vector<16x128xf32>
    %37 = arith.addf %33, %36 : vector<16x128xf32>
    %38 = math.tanh %37 : vector<16x128xf32>
    %39 = arith.truncf %38 : vector<16x128xf32> to vector<16x128xbf16>
    %c16_42 = arith.constant 16 : index
    %c0_43 = arith.constant 0 : index
    %40 = vector.load %arg6[%c16_42, %c0_43] : memref<48x128xbf16, #tpu.memory_space<vmem>>, vector<16x128xbf16>
    tpu.vector_store %arg6[%c16_42, %c0_43], %39 {strides = array<i32>} : memref<48x128xbf16, #tpu.memory_space<vmem>>, vector<16x128xbf16>,
    %c14_44 = arith.constant 14 : index
    %c0_45 = arith.constant 0 : index
    %41 = vector.load %arg6[%c14_44, %c0_45] : memref<48x128xbf16, #tpu.memory_space<vmem>>, vector<16x128xbf16>
    %c1_46 = arith.constant 1 : index
    %c0_47 = arith.constant 0 : index
    %c0_48 = arith.constant 0 : index
    %c0_49 = arith.constant 0 : index
    %42 = vector.load %arg2[%c1_46, %c0_47, %c0_48, %c0_49] : memref<5x5x128x128xbf16, #tpu.memory_space<vmem>>, vector<1x1x128x128xbf16>
    %43 = vector.shape_cast %42 : vector<1x1x128x128xbf16> to vector<128x128xbf16>
    %cst_50 = arith.constant dense<0.000000e+00> : vector<16x128xf32>
    %44 = tpu.matmul %41, %43, %cst_50 {dimension_numbers = #tpu.dot_dimension_numbers<[1], [0], [0], [1], [0, 0, 1, 1], [], []>} : vector<16x128xbf16>, vector<128x128xbf16>, vector<16x128xf32> -> vector<16x128xf32>
    %c15_51 = arith.constant 15 : index
    %c0_52 = arith.constant 0 : index
    %45 = vector.load %arg6[%c15_51, %c0_52] : memref<48x128xbf16, #tpu.memory_space<vmem>>, vector<16x128xbf16>
    %c1_53 = arith.constant 1 : index
    %c1_54 = arith.constant 1 : index
    %c0_55 = arith.constant 0 : index
    %c0_56 = arith.constant 0 : index
    %46 = vector.load %arg2[%c1_53, %c1_54, %c0_55, %c0_56] : memref<5x5x128x128xbf16, #tpu.memory_space<vmem>>, vector<1x1x128x128xbf16>
    %47 = vector.shape_cast %46 : vector<1x1x128x128xbf16> to vector<128x128xbf16>
    %cst_57 = arith.constant dense<0.000000e+00> : vector<16x128xf32>
    %48 = tpu.matmul %45, %47, %cst_57 {dimension_numbers = #tpu.dot_dimension_numbers<[1], [0], [0], [1], [0, 0, 1, 1], [], []>} : vector<16x128xbf16>, vector<128x128xbf16>, vector<16x128xf32> -> vector<16x128xf32>
    %49 = arith.addf %44, %48 : vector<16x128xf32>
    %c16_58 = arith.constant 16 : index
    %c0_59 = arith.constant 0 : index
    %50 = vector.load %arg6[%c16_58, %c0_59] : memref<48x128xbf16, #tpu.memory_space<vmem>>, vector<16x128xbf16>
    %c1_60 = arith.constant 1 : index
    %c2_61 = arith.constant 2 : index
    %c0_62 = arith.constant 0 : index
    %c0_63 = arith.constant 0 : index
    %51 = vector.load %arg2[%c1_60, %c2_61, %c0_62, %c0_63] : memref<5x5x128x128xbf16, #tpu.memory_space<vmem>>, vector<1x1x128x128xbf16>
    %52 = vector.shape_cast %51 : vector<1x1x128x128xbf16> to vector<128x128xbf16>
    %cst_64 = arith.constant dense<0.000000e+00> : vector<16x128xf32>
    %53 = tpu.matmul %50, %52, %cst_64 {dimension_numbers = #tpu.dot_dimension_numbers<[1], [0], [0], [1], [0, 0, 1, 1], [], []>} : vector<16x128xbf16>, vector<128x128xbf16>, vector<16x128xf32> -> vector<16x128xf32>
    %54 = arith.addf %49, %53 : vector<16x128xf32>
    %c17_65 = arith.constant 17 : index
    %c0_66 = arith.constant 0 : index
    %55 = vector.load %arg6[%c17_65, %c0_66] : memref<48x128xbf16, #tpu.memory_space<vmem>>, vector<16x128xbf16>
    %c1_67 = arith.constant 1 : index
    %c3_68 = arith.constant 3 : index
    %c0_69 = arith.constant 0 : index
    %c0_70 = arith.constant 0 : index
    %56 = vector.load %arg2[%c1_67, %c3_68, %c0_69, %c0_70] : memref<5x5x128x128xbf16, #tpu.memory_space<vmem>>, vector<1x1x128x128xbf16>
    %57 = vector.shape_cast %56 : vector<1x1x128x128xbf16> to vector<128x128xbf16>
    %cst_71 = arith.constant dense<0.000000e+00> : vector<16x128xf32>
    %58 = tpu.matmul %55, %57, %cst_71 {dimension_numbers = #tpu.dot_dimension_numbers<[1], [0], [0], [1], [0, 0, 1, 1], [], []>} : vector<16x128xbf16>, vector<128x128xbf16>, vector<16x128xf32> -> vector<16x128xf32>
    %59 = arith.addf %54, %58 : vector<16x128xf32>
    %c18_72 = arith.constant 18 : index
    %c0_73 = arith.constant 0 : index
    %60 = vector.load %arg6[%c18_72, %c0_73] : memref<48x128xbf16, #tpu.memory_space<vmem>>, vector<16x128xbf16>
    %c1_74 = arith.constant 1 : index
    %c4_75 = arith.constant 4 : index
    %c0_76 = arith.constant 0 : index
    %c0_77 = arith.constant 0 : index
    %61 = vector.load %arg2[%c1_74, %c4_75, %c0_76, %c0_77] : memref<5x5x128x128xbf16, #tpu.memory_space<vmem>>, vector<1x1x128x128xbf16>
    %62 = vector.shape_cast %61 : vector<1x1x128x128xbf16> to vector<128x128xbf16>
    %cst_78 = arith.constant dense<0.000000e+00> : vector<16x128xf32>
    %63 = tpu.matmul %60, %62, %cst_78 {dimension_numbers = #tpu.dot_dimension_numbers<[1], [0], [0], [1], [0, 0, 1, 1], [], []>} : vector<16x128xbf16>, vector<128x128xbf16>, vector<16x128xf32> -> vector<16x128xf32>
    %64 = arith.addf %59, %63 : vector<16x128xf32>
    %c1_79 = arith.constant 1 : index
    %c0_80 = arith.constant 0 : index
    %c0_81 = arith.constant 0 : index
    %65 = vector.load %arg3[%c1_79, %c0_80, %c0_81] : memref<5x1x128xf32, #tpu.memory_space<vmem>>, vector<1x1x128xf32>
    %66 = vector.shape_cast %65 : vector<1x1x128xf32> to vector<1x128xf32>
    %67 = vector.broadcast %66 : vector<1x128xf32> to vector<16x128xf32>
    %68 = arith.addf %64, %67 : vector<16x128xf32>
    %69 = math.tanh %68 : vector<16x128xf32>
    %70 = arith.truncf %69 : vector<16x128xf32> to vector<16x128xbf16>
    %c16_82 = arith.constant 16 : index
    %c0_83 = arith.constant 0 : index
    %71 = vector.load %arg5[%c16_82, %c0_83] : memref<48x128xbf16, #tpu.memory_space<vmem>>, vector<16x128xbf16>
    tpu.vector_store %arg5[%c16_82, %c0_83], %70 {strides = array<i32>} : memref<48x128xbf16, #tpu.memory_space<vmem>>, vector<16x128xbf16>,
    %c14_84 = arith.constant 14 : index
    %c0_85 = arith.constant 0 : index
    %72 = vector.load %arg5[%c14_84, %c0_85] : memref<48x128xbf16, #tpu.memory_space<vmem>>, vector<16x128xbf16>
    %c2_86 = arith.constant 2 : index
    %c0_87 = arith.constant 0 : index
    %c0_88 = arith.constant 0 : index
    %c0_89 = arith.constant 0 : index
    %73 = vector.load %arg2[%c2_86, %c0_87, %c0_88, %c0_89] : memref<5x5x128x128xbf16, #tpu.memory_space<vmem>>, vector<1x1x128x128xbf16>
    %74 = vector.shape_cast %73 : vector<1x1x128x128xbf16> to vector<128x128xbf16>
    %cst_90 = arith.constant dense<0.000000e+00> : vector<16x128xf32>
    %75 = tpu.matmul %72, %74, %cst_90 {dimension_numbers = #tpu.dot_dimension_numbers<[1], [0], [0], [1], [0, 0, 1, 1], [], []>} : vector<16x128xbf16>, vector<128x128xbf16>, vector<16x128xf32> -> vector<16x128xf32>
    %c15_91 = arith.constant 15 : index
    %c0_92 = arith.constant 0 : index
    %76 = vector.load %arg5[%c15_91, %c0_92] : memref<48x128xbf16, #tpu.memory_space<vmem>>, vector<16x128xbf16>
    %c2_93 = arith.constant 2 : index
    %c1_94 = arith.constant 1 : index
    %c0_95 = arith.constant 0 : index
    %c0_96 = arith.constant 0 : index
    %77 = vector.load %arg2[%c2_93, %c1_94, %c0_95, %c0_96] : memref<5x5x128x128xbf16, #tpu.memory_space<vmem>>, vector<1x1x128x128xbf16>
    %78 = vector.shape_cast %77 : vector<1x1x128x128xbf16> to vector<128x128xbf16>
    %cst_97 = arith.constant dense<0.000000e+00> : vector<16x128xf32>
    %79 = tpu.matmul %76, %78, %cst_97 {dimension_numbers = #tpu.dot_dimension_numbers<[1], [0], [0], [1], [0, 0, 1, 1], [], []>} : vector<16x128xbf16>, vector<128x128xbf16>, vector<16x128xf32> -> vector<16x128xf32>
    %80 = arith.addf %75, %79 : vector<16x128xf32>
    %c16_98 = arith.constant 16 : index
    %c0_99 = arith.constant 0 : index
    %81 = vector.load %arg5[%c16_98, %c0_99] : memref<48x128xbf16, #tpu.memory_space<vmem>>, vector<16x128xbf16>
    %c2_100 = arith.constant 2 : index
    %c2_101 = arith.constant 2 : index
    %c0_102 = arith.constant 0 : index
    %c0_103 = arith.constant 0 : index
    %82 = vector.load %arg2[%c2_100, %c2_101, %c0_102, %c0_103] : memref<5x5x128x128xbf16, #tpu.memory_space<vmem>>, vector<1x1x128x128xbf16>
    %83 = vector.shape_cast %82 : vector<1x1x128x128xbf16> to vector<128x128xbf16>
    %cst_104 = arith.constant dense<0.000000e+00> : vector<16x128xf32>
    %84 = tpu.matmul %81, %83, %cst_104 {dimension_numbers = #tpu.dot_dimension_numbers<[1], [0], [0], [1], [0, 0, 1, 1], [], []>} : vector<16x128xbf16>, vector<128x128xbf16>, vector<16x128xf32> -> vector<16x128xf32>
    %85 = arith.addf %80, %84 : vector<16x128xf32>
    %c17_105 = arith.constant 17 : index
    %c0_106 = arith.constant 0 : index
    %86 = vector.load %arg5[%c17_105, %c0_106] : memref<48x128xbf16, #tpu.memory_space<vmem>>, vector<16x128xbf16>
    %c2_107 = arith.constant 2 : index
    %c3_108 = arith.constant 3 : index
    %c0_109 = arith.constant 0 : index
    %c0_110 = arith.constant 0 : index
    %87 = vector.load %arg2[%c2_107, %c3_108, %c0_109, %c0_110] : memref<5x5x128x128xbf16, #tpu.memory_space<vmem>>, vector<1x1x128x128xbf16>
    %88 = vector.shape_cast %87 : vector<1x1x128x128xbf16> to vector<128x128xbf16>
    %cst_111 = arith.constant dense<0.000000e+00> : vector<16x128xf32>
    %89 = tpu.matmul %86, %88, %cst_111 {dimension_numbers = #tpu.dot_dimension_numbers<[1], [0], [0], [1], [0, 0, 1, 1], [], []>} : vector<16x128xbf16>, vector<128x128xbf16>, vector<16x128xf32> -> vector<16x128xf32>
    %90 = arith.addf %85, %89 : vector<16x128xf32>
    %c18_112 = arith.constant 18 : index
    %c0_113 = arith.constant 0 : index
    %91 = vector.load %arg5[%c18_112, %c0_113] : memref<48x128xbf16, #tpu.memory_space<vmem>>, vector<16x128xbf16>
    %c2_114 = arith.constant 2 : index
    %c4_115 = arith.constant 4 : index
    %c0_116 = arith.constant 0 : index
    %c0_117 = arith.constant 0 : index
    %92 = vector.load %arg2[%c2_114, %c4_115, %c0_116, %c0_117] : memref<5x5x128x128xbf16, #tpu.memory_space<vmem>>, vector<1x1x128x128xbf16>
    %93 = vector.shape_cast %92 : vector<1x1x128x128xbf16> to vector<128x128xbf16>
    %cst_118 = arith.constant dense<0.000000e+00> : vector<16x128xf32>
    %94 = tpu.matmul %91, %93, %cst_118 {dimension_numbers = #tpu.dot_dimension_numbers<[1], [0], [0], [1], [0, 0, 1, 1], [], []>} : vector<16x128xbf16>, vector<128x128xbf16>, vector<16x128xf32> -> vector<16x128xf32>
    %95 = arith.addf %90, %94 : vector<16x128xf32>
    %c2_119 = arith.constant 2 : index
    %c0_120 = arith.constant 0 : index
    %c0_121 = arith.constant 0 : index
    %96 = vector.load %arg3[%c2_119, %c0_120, %c0_121] : memref<5x1x128xf32, #tpu.memory_space<vmem>>, vector<1x1x128xf32>
    %97 = vector.shape_cast %96 : vector<1x1x128xf32> to vector<1x128xf32>
    %98 = vector.broadcast %97 : vector<1x128xf32> to vector<16x128xf32>
    %99 = arith.addf %95, %98 : vector<16x128xf32>
    %100 = math.tanh %99 : vector<16x128xf32>
    %101 = arith.truncf %100 : vector<16x128xf32> to vector<16x128xbf16>
    %c16_122 = arith.constant 16 : index
    %c0_123 = arith.constant 0 : index
    %102 = vector.load %arg6[%c16_122, %c0_123] : memref<48x128xbf16, #tpu.memory_space<vmem>>, vector<16x128xbf16>
    tpu.vector_store %arg6[%c16_122, %c0_123], %101 {strides = array<i32>} : memref<48x128xbf16, #tpu.memory_space<vmem>>, vector<16x128xbf16>,
    %c14_124 = arith.constant 14 : index
    %c0_125 = arith.constant 0 : index
    %103 = vector.load %arg6[%c14_124, %c0_125] : memref<48x128xbf16, #tpu.memory_space<vmem>>, vector<16x128xbf16>
    %c3_126 = arith.constant 3 : index
    %c0_127 = arith.constant 0 : index
    %c0_128 = arith.constant 0 : index
    %c0_129 = arith.constant 0 : index
    %104 = vector.load %arg2[%c3_126, %c0_127, %c0_128, %c0_129] : memref<5x5x128x128xbf16, #tpu.memory_space<vmem>>, vector<1x1x128x128xbf16>
    %105 = vector.shape_cast %104 : vector<1x1x128x128xbf16> to vector<128x128xbf16>
    %cst_130 = arith.constant dense<0.000000e+00> : vector<16x128xf32>
    %106 = tpu.matmul %103, %105, %cst_130 {dimension_numbers = #tpu.dot_dimension_numbers<[1], [0], [0], [1], [0, 0, 1, 1], [], []>} : vector<16x128xbf16>, vector<128x128xbf16>, vector<16x128xf32> -> vector<16x128xf32>
    %c15_131 = arith.constant 15 : index
    %c0_132 = arith.constant 0 : index
    %107 = vector.load %arg6[%c15_131, %c0_132] : memref<48x128xbf16, #tpu.memory_space<vmem>>, vector<16x128xbf16>
    %c3_133 = arith.constant 3 : index
    %c1_134 = arith.constant 1 : index
    %c0_135 = arith.constant 0 : index
    %c0_136 = arith.constant 0 : index
    %108 = vector.load %arg2[%c3_133, %c1_134, %c0_135, %c0_136] : memref<5x5x128x128xbf16, #tpu.memory_space<vmem>>, vector<1x1x128x128xbf16>
    %109 = vector.shape_cast %108 : vector<1x1x128x128xbf16> to vector<128x128xbf16>
    %cst_137 = arith.constant dense<0.000000e+00> : vector<16x128xf32>
    %110 = tpu.matmul %107, %109, %cst_137 {dimension_numbers = #tpu.dot_dimension_numbers<[1], [0], [0], [1], [0, 0, 1, 1], [], []>} : vector<16x128xbf16>, vector<128x128xbf16>, vector<16x128xf32> -> vector<16x128xf32>
    %111 = arith.addf %106, %110 : vector<16x128xf32>
    %c16_138 = arith.constant 16 : index
    %c0_139 = arith.constant 0 : index
    %112 = vector.load %arg6[%c16_138, %c0_139] : memref<48x128xbf16, #tpu.memory_space<vmem>>, vector<16x128xbf16>
    %c3_140 = arith.constant 3 : index
    %c2_141 = arith.constant 2 : index
    %c0_142 = arith.constant 0 : index
    %c0_143 = arith.constant 0 : index
    %113 = vector.load %arg2[%c3_140, %c2_141, %c0_142, %c0_143] : memref<5x5x128x128xbf16, #tpu.memory_space<vmem>>, vector<1x1x128x128xbf16>
    %114 = vector.shape_cast %113 : vector<1x1x128x128xbf16> to vector<128x128xbf16>
    %cst_144 = arith.constant dense<0.000000e+00> : vector<16x128xf32>
    %115 = tpu.matmul %112, %114, %cst_144 {dimension_numbers = #tpu.dot_dimension_numbers<[1], [0], [0], [1], [0, 0, 1, 1], [], []>} : vector<16x128xbf16>, vector<128x128xbf16>, vector<16x128xf32> -> vector<16x128xf32>
    %116 = arith.addf %111, %115 : vector<16x128xf32>
    %c17_145 = arith.constant 17 : index
    %c0_146 = arith.constant 0 : index
    %117 = vector.load %arg6[%c17_145, %c0_146] : memref<48x128xbf16, #tpu.memory_space<vmem>>, vector<16x128xbf16>
    %c3_147 = arith.constant 3 : index
    %c3_148 = arith.constant 3 : index
    %c0_149 = arith.constant 0 : index
    %c0_150 = arith.constant 0 : index
    %118 = vector.load %arg2[%c3_147, %c3_148, %c0_149, %c0_150] : memref<5x5x128x128xbf16, #tpu.memory_space<vmem>>, vector<1x1x128x128xbf16>
    %119 = vector.shape_cast %118 : vector<1x1x128x128xbf16> to vector<128x128xbf16>
    %cst_151 = arith.constant dense<0.000000e+00> : vector<16x128xf32>
    %120 = tpu.matmul %117, %119, %cst_151 {dimension_numbers = #tpu.dot_dimension_numbers<[1], [0], [0], [1], [0, 0, 1, 1], [], []>} : vector<16x128xbf16>, vector<128x128xbf16>, vector<16x128xf32> -> vector<16x128xf32>
    %121 = arith.addf %116, %120 : vector<16x128xf32>
    %c18_152 = arith.constant 18 : index
    %c0_153 = arith.constant 0 : index
    %122 = vector.load %arg6[%c18_152, %c0_153] : memref<48x128xbf16, #tpu.memory_space<vmem>>, vector<16x128xbf16>
    %c3_154 = arith.constant 3 : index
    %c4_155 = arith.constant 4 : index
    %c0_156 = arith.constant 0 : index
    %c0_157 = arith.constant 0 : index
    %123 = vector.load %arg2[%c3_154, %c4_155, %c0_156, %c0_157] : memref<5x5x128x128xbf16, #tpu.memory_space<vmem>>, vector<1x1x128x128xbf16>
    %124 = vector.shape_cast %123 : vector<1x1x128x128xbf16> to vector<128x128xbf16>
    %cst_158 = arith.constant dense<0.000000e+00> : vector<16x128xf32>
    %125 = tpu.matmul %122, %124, %cst_158 {dimension_numbers = #tpu.dot_dimension_numbers<[1], [0], [0], [1], [0, 0, 1, 1], [], []>} : vector<16x128xbf16>, vector<128x128xbf16>, vector<16x128xf32> -> vector<16x128xf32>
    %126 = arith.addf %121, %125 : vector<16x128xf32>
    %c3_159 = arith.constant 3 : index
    %c0_160 = arith.constant 0 : index
    %c0_161 = arith.constant 0 : index
    %127 = vector.load %arg3[%c3_159, %c0_160, %c0_161] : memref<5x1x128xf32, #tpu.memory_space<vmem>>, vector<1x1x128xf32>
    %128 = vector.shape_cast %127 : vector<1x1x128xf32> to vector<1x128xf32>
    %129 = vector.broadcast %128 : vector<1x128xf32> to vector<16x128xf32>
    %130 = arith.addf %126, %129 : vector<16x128xf32>
    %131 = math.tanh %130 : vector<16x128xf32>
    %132 = arith.truncf %131 : vector<16x128xf32> to vector<16x128xbf16>
    %c16_162 = arith.constant 16 : index
    %c0_163 = arith.constant 0 : index
    %133 = vector.load %arg5[%c16_162, %c0_163] : memref<48x128xbf16, #tpu.memory_space<vmem>>, vector<16x128xbf16>
    tpu.vector_store %arg5[%c16_162, %c0_163], %132 {strides = array<i32>} : memref<48x128xbf16, #tpu.memory_space<vmem>>, vector<16x128xbf16>,
    %c14_164 = arith.constant 14 : index
    %c0_165 = arith.constant 0 : index
    %134 = vector.load %arg5[%c14_164, %c0_165] : memref<48x128xbf16, #tpu.memory_space<vmem>>, vector<16x128xbf16>
    %c4_166 = arith.constant 4 : index
    %c0_167 = arith.constant 0 : index
    %c0_168 = arith.constant 0 : index
    %c0_169 = arith.constant 0 : index
    %135 = vector.load %arg2[%c4_166, %c0_167, %c0_168, %c0_169] : memref<5x5x128x128xbf16, #tpu.memory_space<vmem>>, vector<1x1x128x128xbf16>
    %136 = vector.shape_cast %135 : vector<1x1x128x128xbf16> to vector<128x128xbf16>
    %cst_170 = arith.constant dense<0.000000e+00> : vector<16x128xf32>
    %137 = tpu.matmul %134, %136, %cst_170 {dimension_numbers = #tpu.dot_dimension_numbers<[1], [0], [0], [1], [0, 0, 1, 1], [], []>} : vector<16x128xbf16>, vector<128x128xbf16>, vector<16x128xf32> -> vector<16x128xf32>
    %c15_171 = arith.constant 15 : index
    %c0_172 = arith.constant 0 : index
    %138 = vector.load %arg5[%c15_171, %c0_172] : memref<48x128xbf16, #tpu.memory_space<vmem>>, vector<16x128xbf16>
    %c4_173 = arith.constant 4 : index
    %c1_174 = arith.constant 1 : index
    %c0_175 = arith.constant 0 : index
    %c0_176 = arith.constant 0 : index
    %139 = vector.load %arg2[%c4_173, %c1_174, %c0_175, %c0_176] : memref<5x5x128x128xbf16, #tpu.memory_space<vmem>>, vector<1x1x128x128xbf16>
    %140 = vector.shape_cast %139 : vector<1x1x128x128xbf16> to vector<128x128xbf16>
    %cst_177 = arith.constant dense<0.000000e+00> : vector<16x128xf32>
    %141 = tpu.matmul %138, %140, %cst_177 {dimension_numbers = #tpu.dot_dimension_numbers<[1], [0], [0], [1], [0, 0, 1, 1], [], []>} : vector<16x128xbf16>, vector<128x128xbf16>, vector<16x128xf32> -> vector<16x128xf32>
    %142 = arith.addf %137, %141 : vector<16x128xf32>
    %c16_178 = arith.constant 16 : index
    %c0_179 = arith.constant 0 : index
    %143 = vector.load %arg5[%c16_178, %c0_179] : memref<48x128xbf16, #tpu.memory_space<vmem>>, vector<16x128xbf16>
    %c4_180 = arith.constant 4 : index
    %c2_181 = arith.constant 2 : index
    %c0_182 = arith.constant 0 : index
    %c0_183 = arith.constant 0 : index
    %144 = vector.load %arg2[%c4_180, %c2_181, %c0_182, %c0_183] : memref<5x5x128x128xbf16, #tpu.memory_space<vmem>>, vector<1x1x128x128xbf16>
    %145 = vector.shape_cast %144 : vector<1x1x128x128xbf16> to vector<128x128xbf16>
    %cst_184 = arith.constant dense<0.000000e+00> : vector<16x128xf32>
    %146 = tpu.matmul %143, %145, %cst_184 {dimension_numbers = #tpu.dot_dimension_numbers<[1], [0], [0], [1], [0, 0, 1, 1], [], []>} : vector<16x128xbf16>, vector<128x128xbf16>, vector<16x128xf32> -> vector<16x128xf32>
    %147 = arith.addf %142, %146 : vector<16x128xf32>
    %c17_185 = arith.constant 17 : index
    %c0_186 = arith.constant 0 : index
    %148 = vector.load %arg5[%c17_185, %c0_186] : memref<48x128xbf16, #tpu.memory_space<vmem>>, vector<16x128xbf16>
    %c4_187 = arith.constant 4 : index
    %c3_188 = arith.constant 3 : index
    %c0_189 = arith.constant 0 : index
    %c0_190 = arith.constant 0 : index
    %149 = vector.load %arg2[%c4_187, %c3_188, %c0_189, %c0_190] : memref<5x5x128x128xbf16, #tpu.memory_space<vmem>>, vector<1x1x128x128xbf16>
    %150 = vector.shape_cast %149 : vector<1x1x128x128xbf16> to vector<128x128xbf16>
    %cst_191 = arith.constant dense<0.000000e+00> : vector<16x128xf32>
    %151 = tpu.matmul %148, %150, %cst_191 {dimension_numbers = #tpu.dot_dimension_numbers<[1], [0], [0], [1], [0, 0, 1, 1], [], []>} : vector<16x128xbf16>, vector<128x128xbf16>, vector<16x128xf32> -> vector<16x128xf32>
    %152 = arith.addf %147, %151 : vector<16x128xf32>
    %c18_192 = arith.constant 18 : index
    %c0_193 = arith.constant 0 : index
    %153 = vector.load %arg5[%c18_192, %c0_193] : memref<48x128xbf16, #tpu.memory_space<vmem>>, vector<16x128xbf16>
    %c4_194 = arith.constant 4 : index
    %c4_195 = arith.constant 4 : index
    %c0_196 = arith.constant 0 : index
    %c0_197 = arith.constant 0 : index
    %154 = vector.load %arg2[%c4_194, %c4_195, %c0_196, %c0_197] : memref<5x5x128x128xbf16, #tpu.memory_space<vmem>>, vector<1x1x128x128xbf16>
    %155 = vector.shape_cast %154 : vector<1x1x128x128xbf16> to vector<128x128xbf16>
    %cst_198 = arith.constant dense<0.000000e+00> : vector<16x128xf32>
    %156 = tpu.matmul %153, %155, %cst_198 {dimension_numbers = #tpu.dot_dimension_numbers<[1], [0], [0], [1], [0, 0, 1, 1], [], []>} : vector<16x128xbf16>, vector<128x128xbf16>, vector<16x128xf32> -> vector<16x128xf32>
    %157 = arith.addf %152, %156 : vector<16x128xf32>
    %c4_199 = arith.constant 4 : index
    %c0_200 = arith.constant 0 : index
    %c0_201 = arith.constant 0 : index
    %158 = vector.load %arg3[%c4_199, %c0_200, %c0_201] : memref<5x1x128xf32, #tpu.memory_space<vmem>>, vector<1x1x128xf32>
    %159 = vector.shape_cast %158 : vector<1x1x128xf32> to vector<1x128xf32>
    %160 = vector.broadcast %159 : vector<1x128xf32> to vector<16x128xf32>
    %161 = arith.addf %157, %160 : vector<16x128xf32>
    %162 = vector.shape_cast %161 : vector<16x128xf32> to vector<1x16x128xf32>
    %c0_202 = arith.constant 0 : index
    %c0_203 = arith.constant 0 : index
    %c0_204 = arith.constant 0 : index
    %163 = vector.load %arg4[%c0_202, %c0_203, %c0_204] : memref<1x16x128xf32, #tpu.memory_space<vmem>>, vector<1x16x128xf32>
    tpu.vector_store %arg4[%c0_202, %c0_203, %c0_204], %162 {strides = array<i32>} : memref<1x16x128xf32, #tpu.memory_space<vmem>>, vector<1x16x128xf32>,
    return
  }
  func.func @transform_0(%arg0: i32) -> (i32, i32, i32) {
    %c0_i32 = arith.constant 0 : i32
    %c0_i32_0 = arith.constant 0 : i32
    %c0_i32_1 = arith.constant 0 : i32
    return %arg0, %c0_i32, %c0_i32_0 : i32, i32, i32
  }
  func.func @transform_1(%arg0: i32) -> (i32, i32, i32, i32) {
    %c0_i32 = arith.constant 0 : i32
    %c0_i32_0 = arith.constant 0 : i32
    %c0_i32_1 = arith.constant 0 : i32
    %c0_i32_2 = arith.constant 0 : i32
    %c0_i32_3 = arith.constant 0 : i32
    return %c0_i32, %c0_i32_0, %c0_i32_1, %c0_i32_2 : i32, i32, i32, i32
  }
  func.func @transform_2(%arg0: i32) -> (i32, i32, i32) {
    %c0_i32 = arith.constant 0 : i32
    %c0_i32_0 = arith.constant 0 : i32
    %c0_i32_1 = arith.constant 0 : i32
    %c0_i32_2 = arith.constant 0 : i32
    return %c0_i32, %c0_i32_0, %c0_i32_1 : i32, i32, i32
  }
  func.func @transform_3(%arg0: i32) -> (i32, i32, i32) {
    %c0_i32 = arith.constant 0 : i32
    %c0_i32_0 = arith.constant 0 : i32
    %c0_i32_1 = arith.constant 0 : i32
    return %arg0, %c0_i32, %c0_i32_0 : i32, i32, i32
  }
}

</mosaic_0001>

<bundles_post_ra>
// kernel: tpu_custom_call.1
= control target key start
LH: loop header
LB: loop body
LE: loop exit
PB: predicated region body
PF: predicated region fallthrough
CT: control target
= control target key end

     0   :  { %8 = vsyncpa [#allocation5], 0  ;;  %s5234_s0 = inlined_call_operand.hbm [shape: bf16[2,16,128], index: 0, kind: input, shape index: {}]   ;;  %s5235_s1 = inlined_call_operand.hbm [shape: bf16[5,5,128,128], index: 1, kind: input, shape index: {}]   ;;  %s5236_s2 = inlined_call_operand.vmem [shape: f32[5,1,128], index: 2, kind: input, shape index: {}]   ;;  %s5237_s3 = inlined_call_operand.hbm [shape: f32[2,16,128], index: 3, kind: output, shape index: {}]  }
   0x1   :  { %10 = vsyncpa [#allocation5 + $0x1], 0 }
   0x2   :  { %11 = vsyncpa [#allocation8], 0 }
   0x3   :  { %12 = vsyncpa [#allocation6], 0 }
   0x4   :  { %14 = vsyncpa [#allocation6 + $0x1], 0  ;;  %s4679_s12 = smov 0   ;;  %s4681_s13 = smov 0  }
   0x5   :  { %s4683_s14 = smov 0   ;;  %s4685_s15 = smov 0  }
   0x6 LB: > { %s4700_s16 = sadd.s32 4294967295, %s4647_s15   ;;  %s3285_s17 = sadd.s32 4294967294, %s4647_s15   ;;  %s4647_s15 = sphi %s4685_s15, %s5257_s15   ;;  %s4643_s14 = sphi %s4683_s14, %s5256_s14   ;;  %s4639_s13 = sphi %s4681_s13, %s5255_s13   ;;  %s4635_s12 = sphi %s4679_s12, %s5254_s12  }
   0x7   : > { %p40_p0 = scmp.ne.s32.totalorder %s4639_s13, %s4635_s12  ;;  %p5238_p1 = scmp.eq.s32.totalorder %s4700_s16, 0 }
   0x8   : > { %p112_p3 = scmp.eq.s32.totalorder %s3285_s17, 1  ;;  %p3286_p5 = scmp.ge.s32.totalorder %s4647_s15, 1 }
   0x9   : > { %p4709_p4 = por %p5238_p1, %p40_p0  ;;  %p119_p7 = scmp.lt.s32.totalorder %s4647_s15, 3 }
   0xa   : > { %p4714_p6 = por %p112_p3, %p40_p0  ;;  %s4649_s21 = smov [#allocation7]  }
   0xb   : > { %s5241_s18 = scalar_select %p4709_p4, 1, 0 }
   0xc   : > { %s5242_s19 = scalar_select %p4714_p6, 1, 0 }
   0xd   : > { %p4719_p8 = pnand %p3286_p5, %p119_p7  ;;  %s131_s22 = sshll.u32 %s4649_s21, 4  ;;  %s4723_s22 = int_to_ptr.vmem [resolvable:$true] %s131_s22 }
   0xe   : > { %s4735_s24 = sadd.s32 1, %s4647_s15   ;;  %s27_s25 = sadd.s32 1, %s4643_s14 }
   0xf   : > { %s5243_s20 = scalar_select %p4719_p8, 1, 0 }
  0x10   : > { %p4246_p9 = pneg %p4719_p8  ;;  %s24_s26 = ssub.s32 %s4647_s15, %s4735_s24 }
  0x11   : > { %s4519_s29 = scalar_lea.hbm %s5235_s1, 25600 }
  0x12   : > { %p4730_p11 = pnand %p4246_p9, %p5238_p1  ;;  %p4520_p12 = scmp.ne.s32.totalorder %s5235_s1, %s4519_s29 }
  0x13   : > { %p4526_p5 = scmp.lt.u32.totalorder %s4519_s29, %s5235_s1 }
  0x14   : > { %p4521_p13 = pneg %p4730_p11 }
  0x16   : > { %p4522_p0 = pnand %p4521_p13, %p4520_p12 }
  0x18   : > { %p4523_p3 = pneg %p4522_p0 }
  0x1a   : > { %p4528_p7 = pnand %p4526_p5, %p4523_p3 }
  0x1c   : > { %4531 = shalt.err (!%p4528_p7)
}
  0x1d   : > { %s4532_s7 = scalar_lea.vmem %s4723_s22, 25600  ;;  %p4540_p2 = scmp.lt.s32.totalorder %s4723_s22, %s4723_s22 }
  0x1e   : > { %p4533_p9 = scmp.ne.s32.totalorder %s4723_s22, %s4532_s7  ;;  %p4541_p6 = scmp.lt.s32.totalorder %s4532_s7, %s4532_s7 }
  0x20   : > { %p4535_p10 = pnand %p4533_p9, %p4521_p13  ;;  %p4542_p4 = por %p4541_p6, %p4540_p2 }
  0x22   : > { %p4536_p1 = pneg %p4535_p10 }
  0x24   : > { %p4543_p8 = pnand %p4542_p4, %p4536_p1 }
  0x26   : > { %4546 = shalt.err (!%p4543_p8)
}
  0x27   : > { %s4650_s8 = smov 64   ;;  %s4651_s9 = smov 4  }
  0x28   : > { %4249 = dma.hbm_to_vmem [thread:$0]  (!%p4730_p11), %s5235_s1, 25600, %s4723_s22, [#allocation8], %s4650_s8, %s4650_s8, %s4651_s9  }
  0x29   : > { %p25_p1 = scmp.eq.s32.totalorder %s24_s26, 0  ;;  %p34_p2 = scmp.ne.s32.totalorder %s4643_s14, %s4639_s13 }
  0x2a   : > { %p35_p4 = scmp.eq.s32.totalorder %s4647_s15, 0  ;;  %p4259_p6 = scmp.lt.s32.totalorder %s4647_s15, 2 }
  0x2b   : > { %s4769_s17 = scalar_select %p25_p1, %s4643_s14, %s27_s25  }
  0x2c   : > { %p36_p8 = por %p35_p4, %p34_p2  ;;  %p5245_p10 = scmp.eq.s32.totalorder %s4700_s16, 1 }
  0x2d   : > { %s148_s23 = sand.u32 1, %s4643_s14   ;;  %s3511_s27 = sshll.u32 %s4647_s15, 7 }
  0x2e   : > { %p4773_p12 = por %p5245_p10, %p34_p2  ;;  %s3289_s28 = sshll.u32 %s148_s23, 3 }
  0x2f   : > { %s4782_s4 = scalar_lea.hbm %s5234_s0, %s3511_s27  ;;  %s152_s22 = scalar_lea.vmem [#allocation4], %s3289_s28 }
  0x30   : > { %s159_s25 = sshll.u32 %s152_s22, 4  ;;  %p4784_p11 = pnand %p4259_p6, %p36_p8  ;;  %s4788_s25 = int_to_ptr.vmem [resolvable:$true] %s159_s25 }
  0x31   : > { %s4790_s5 = scalar_lea.sflag [#allocation5], %s148_s23  ;;  %s4547_s6 = scalar_lea.hbm %s4782_s4, 128 }
  0x32   : > { %p4548_p13 = scmp.ne.s32.totalorder %s4782_s4, %s4547_s6  ;;  %p4549_p0 = pneg %p4784_p11 }
  0x33   : > { %s4552_s11 = scalar_lea.hbm %s5234_s0, 256  ;;  %p4553_p7 = scmp.lt.u32.totalorder %s4782_s4, %s5234_s0 }
  0x34   : > { %p4550_p3 = pnand %p4549_p0, %p4548_p13  ;;  %p4554_p9 = scmp.lt.u32.totalorder %s4552_s11, %s4547_s6 }
  0x35   : > { %p4556_p2 = scmp.lt.u32.totalorder %s4547_s6, %s4782_s4 }
  0x36   : > { %p4551_p5 = pneg %p4550_p3  ;;  %p4555_p1 = por %p4554_p9, %p4553_p7 }
  0x38   : > { %p4557_p4 = por %p4556_p2, %p4555_p1 }
  0x3a   : > { %p4558_p6 = pnand %p4557_p4, %p4551_p5 }
  0x3c   : > { %4561 = shalt.err (!%p4558_p6)
}
  0x3d   : > { %s4562_s23 = scalar_lea.vmem %s4788_s25, 128  ;;  %s4652_s29 = smov [#allocation4]  }
  0x3e   : > { %p4563_p8 = scmp.ne.s32.totalorder %s4788_s25, %s4562_s23  ;;  %s4567_s30 = sshll.u32 %s4652_s29, 4  ;;  %s4568_s30 = int_to_ptr.vmem [resolvable:$false] %s4567_s30 }
  0x3f   : > { %s4569_s22 = scalar_lea.vmem %s4568_s30, 256  ;;  %p4570_p3 = scmp.lt.s32.totalorder %s4788_s25, %s4568_s30 }
  0x40   : > { %p4565_p10 = pnand %p4563_p8, %p4549_p0  ;;  %p4571_p7 = scmp.lt.s32.totalorder %s4569_s22, %s4562_s23 }
  0x42   : > { %p4566_p13 = pneg %p4565_p10  ;;  %p4572_p9 = por %p4571_p7, %p4570_p3 }
  0x44   : > { %p4573_p1 = pnand %p4572_p9, %p4566_p13 }
  0x46   : > { %4576 = shalt.err (!%p4573_p1)
}
  0x47   : > { %4253 = dma.hbm_to_vmem [thread:$0]  (!%p4784_p11), %s4782_s4, 128, %s4788_s25, %s4790_s5, %s4650_s8, %s4650_s8, %s4651_s9  }
  0x48   : > { %p5248_p0 = scmp.ne.s32.totalorder %s5243_s20, 0 }
  0x49   : > { %s4824_s6 = sand.u32 (!%p5248_p0), 1, %s4639_s13   ;;  %p5249_p5 = scmp.ne.s32.totalorder (!%p5248_p0), %s5241_s18, 0 }
  0x4a   : > { %171 = sbr.rel (%p5248_p0) target bundleno = 1624 (0x658), region = 32  ;;  %s3293_s7 = sshll.u32 (!%p5248_p0), %s4824_s6, 3 }
  0x4b   : > { %s174_s10 = scalar_lea.sflag (!%p5248_p0), [#allocation5], %s4824_s6  ;;  %s4828_s11 = scalar_lea.vmem (!%p5248_p0), [#allocation4], %s3293_s7 }
  0x51   : > { %4622 = dma.done.wait (%p5249_p5), %s174_s10, 128  }
  0x52   : > { %4624 = vsyncadd (%p5249_p5), %s174_s10, 4294967168  ;;  %p5250_p11 = scmp.eq.s32.totalorder %s4700_s16, 0 }
  0x54   : > { %4626 = dma.done.wait (%p5250_p11), [#allocation8], 25600   ;;  %p5251_p2 = pmov %p5250_p11 }
  0x55   : > { %v4653_v0 = vmov 0.0   ;;  %v4654_v1 = vmov 0   ;;  %vm4655_vm0 = vmmov 0   ;;  %v4302_v2 = vld [vmem:[#allocation7 + $0x40] sm:$0xff]   ;;  %v4304_v4 = vld [vmem:[#allocation7 + $0x48] sm:$0xff]   ;;  %v4306_v6 = vld [vmem:[#allocation7 + $0x50] sm:$0xff]  }
  0x56   : > { %4628 = vsyncadd (%p5251_p2), [#allocation8], 4294941696  ;;  %3738 = vmatprep.subr.bf16.mxu0 %v4653_v0  ;;  %3758 = vmatprep.subr.bf16.mxu1 %v4653_v0  ;;  %205 = vst [vmem:[#allocation2] sm:$0xff] %v4654_v1  ;;  %v4303_v3 = vld [vmem:[#allocation7] sm:$0xff]   ;;  %v4305_v5 = vld [vmem:[#allocation7 + $0x8] sm:$0xff]   ;;  %vm359_vm2 = vcmask 1040384  }
  0x57   : > { %206 = vst [vmem:[#allocation2 + $0x10] sm:$0xff] %v4654_v1  ;;  %207 = vst [vmem:[#allocation3] sm:$0xff] %v4654_v1  ;;  %3754 = vmatprep.mubr.msk.bf16.mxu0 %vm4655_vm0, %v4653_v0  ;;  %3774 = vmatprep.mubr.msk.bf16.mxu1 %vm4655_vm0, %v4653_v0  ;;  %v4307_v7 = vld [vmem:[#allocation7 + $0x10] sm:$0xff]   ;;  %v4308_v8 = vld [vmem:[#allocation7 + $0x58] sm:$0xff]   ;;  %vm254_vm1 = vsmask.f32 256 }
  0x58   : > { %208 = vst [vmem:[#allocation3 + $0x10] sm:$0xff] %v4654_v1  ;;  %3739 = vmatpush3.bf16.msra.mxu0 %v4302_v2  ;;  %3759 = vmatpush3.bf16.msra.mxu1 %v4303_v3  ;;  %v4309_v9 = vld [vmem:[#allocation7 + $0x18] sm:$0xff]   ;;  %v4310_v10 = vld [vmem:[#allocation7 + $0x60] sm:$0xff]   ;;  %v4312_v14 = vld [vmem:[#allocation7 + $0x68] sm:$0xff]   ;;  %vm580_vm3 = vsmask.f32 7424 }
  0x59   : > { %3740 = vmatprep.subr.bf16.mxu0 %v4653_v0  ;;  %3760 = vmatprep.subr.bf16.mxu1 %v4653_v0  ;;  %v4311_v11 = vld [vmem:[#allocation7 + $0x20] sm:$0xff]   ;;  %v4853_v12 = vld [vmem:[%s4828_s11] sm:$0xff]   ;;  %v4313_v15 = vld [vmem:[#allocation7 + $0x28] sm:$0xff]   ;;  %vm705_vm4 = vcmask 1046528   ;;  %s3295_s27 = sshll.u32 %s4824_s6, 4  ;;  %s3512_s22 = sshll.u32 %s4700_s16, 8 }
  0x5a   : > { %217 = vst [vmem:[#allocation2 + $0x8] sm:$0xff] %v4853_v12  ;;  %v260_v16 = vshrl.u32 %v4853_v12, 16  ;;  %v4314_v17 = vld [vmem:[#allocation7 + $0x70] sm:$0xff]   ;;  %v263_v20 = vshll.u32 %v4853_v12, 16  ;;  %v4316_v22 = vld [vmem:[#allocation7 + $0x78] sm:$0xff]   ;;  %v4319_v30 = vld [vmem:[#allocation7 + $0x80] sm:$0xff]   ;;  %s5190_s11 = scalar_lea.hbm %s5237_s3, %s3512_s22 }
  0x5b   : > { %v4315_v21 = vld [vmem:[#allocation7 + $0x30] sm:$0xff]   ;;  %v4317_v24 = vld [vmem:[#allocation7 + $0x38] sm:$0xff]   ;;  %v4320_v32 = vld [vmem:[#allocation7 + $0xc0] sm:$0xff]   ;;  %s203_s29 = scalar_lea.vmem [#allocation9], %s3295_s27  ;;  %s3189_s18 = scalar_lea.sflag [#allocation6], %s4824_s6 }
  0x5c   : > { %3741 = vmatpush3.bf16.msra.mxu0 %v4304_v4  ;;  %3761 = vmatpush3.bf16.msra.mxu1 %v4305_v5  ;;  %v262_v19 = vrot.slane %v260_v16, 7  ;;  %v4321_v33 = vld [vmem:[#allocation7 + $0x88] sm:$0xff]   ;;  %v4323_v36 = vld [vmem:[#allocation7 + $0x90] sm:$0xff]   ;;  %v4325_v39 = vld [vmem:[#allocation7 + $0x98] sm:$0xff]   ;;  %v586_v40 = vrot.slane %v263_v20, 1  ;;  %s3202_s30 = sshll.u32 %s203_s29, 4  ;;  %s5185_s30 = int_to_ptr.vmem [resolvable:$true] %s3202_s30 }
  0x5d   : > { %3742 = vmatprep.subr.bf16.mxu0 %v4653_v0  ;;  %3762 = vmatprep.subr.bf16.mxu1 %v4653_v0  ;;  %v218_v13 = vld [vmem:[#allocation2] sm:$0x80]  ;;  %v4322_v34 = vld [vmem:[#allocation7 + $0xc8] sm:$0xff]   ;;  %v4324_v37 = vld [vmem:[#allocation7 + $0xd0] sm:$0xff]   ;;  %s4577_s20 = scalar_lea.vmem %s5185_s30, 256  ;;  %s4656_s16 = smov [#allocation9]  }
  0x5e   : > { %v256_v18 = vshrl.u32 %v218_v13, 16  ;;  %v265_v26 = vor.u32 %v263_v20, %v262_v19  ;;  %v360_v27 = vrot.slane %v218_v13, 7  ;;  %v4874_v35 = vld [vmem:[#allocation2 + $0x10] sm:$0x1]  ;;  %v4326_v41 = vld [vmem:[#allocation7 + $0xd8] sm:$0xff]   ;;  %v4327_v46 = vld [vmem:[#allocation7 + $0xa0] sm:$0xff]   ;;  %v587_v54 = vor.u32 %v586_v40, %v260_v16  ;;  %p4578_p4 = scmp.ne.s32.totalorder %s5185_s30, %s4577_s20 }
  0x5f   : > { %v589_v38 = vshll.u32 %v4874_v35, 16  ;;  %v707_v43 = vrot.slane %v4874_v35, 1  ;;  %v4328_v47 = vld [vmem:[#allocation7 + $0xe0] sm:$0xff]   ;;  %v4329_v48 = vld [vmem:[#allocation7 + $0xa8] sm:$0xff]   ;;  %v4331_v50 = vld [vmem:[#allocation7 + $0xb0] sm:$0xff]   ;;  %s4581_s8 = sshll.u32 %s4656_s16, 4  ;;  %s4582_s8 = int_to_ptr.vmem [resolvable:$false] %s4581_s8 }
  0x60   : > { %3743 = vmatpush3.bf16.msra.mxu0 %v4306_v6  ;;  %3763 = vmatpush3.bf16.msra.mxu1 %v4307_v7  ;;  %v258_v25 = vrot.slane %v256_v18, 7  ;;  %v4330_v49 = vld [vmem:[#allocation7 + $0xe8] sm:$0xff]   ;;  %v4332_v51 = vld [vmem:[#allocation7 + $0xf0] sm:$0xff]   ;;  %v4333_v52 = vld [vmem:[#allocation7 + $0xb8] sm:$0xff]   ;;  %p4579_p6 = pnand %p4578_p4, %p4773_p12  ;;  %s4583_s9 = scalar_lea.vmem %s4582_s8, 512 }
  0x61   : > { %3744 = vmatprep.subr.bf16.mxu0 %v4653_v0  ;;  %3764 = vmatprep.subr.bf16.mxu1 %v4653_v0  ;;  %v219_v23 = vld [vmem:[#allocation2 + $0x8] sm:$0x7f]  ;;  %v591_v44 = vrot.slane %v589_v38, 1  ;;  %v4334_v53 = vld [vmem:[#allocation7 + $0xf8] sm:$0xff]   ;;  %v4335_v55 = vld [vmem:[#allocation7 + $0x100] sm:$0xff]   ;;  %p4584_p10 = scmp.lt.s32.totalorder %s5185_s30, %s4582_s8  ;;  %p4585_p13 = scmp.lt.s32.totalorder %s4583_s9, %s4577_s20 }
  0x62   : > { %v361_v28 = vrot.slane %v219_v23, 7  ;;  %v266_v29 = vsel %vm254_vm1, %v258_v25, %v265_v26  ;;  %v4881_v42 = vld [vmem:[#allocation2 + $0x8] sm:$0xfe]  ;;  %v4337_v58 = vld [vmem:[#allocation7 + $0x110] sm:$0xff]   ;;  %v4338_v59 = vld [vmem:[#allocation7 + $0x118] sm:$0xff]   ;;  %p4580_p8 = pneg %p4579_p6 }
  0x63   : > { %v706_v45 = vrot.slane %v4881_v42, 1  ;;  %v592_v56 = vsel %vm580_vm3, %v587_v54, %v591_v44  ;;  %v4336_v57 = vld [vmem:[#allocation7 + $0x108] sm:$0xff]   ;;  %v4339_v60 = vld [vmem:[#allocation7 + $0x120] sm:$0xff]   ;;  %v4341_v62 = vld [vmem:[#allocation7 + $0x130] sm:$0xff]   ;;  %p4586_p3 = por %p4585_p13, %p4584_p10 }
  0x64   : > { %3745 = vmatpush3.bf16.msra.mxu0 %v4308_v8  ;;  %3765 = vmatpush3.bf16.msra.mxu1 %v4309_v9  ;;  %v362_v31 = vsel %vm359_vm2, %v360_v27, %v361_v28  ;;  %v4340_v61 = vld [vmem:[#allocation7 + $0x128] sm:$0xff]   ;;  %v4342_v63 = vld [vmem:[#allocation7 + $0x138] sm:$0xff]   ;;  %v4343_v2 = vld [vmem:[#allocation7 + $0x140] sm:$0xff]  }
  0x65   : > { %3746 = vmatprep.subr.bf16.mxu0 %v4653_v0  ;;  %3766 = vmatprep.subr.bf16.mxu1 %v4653_v0  ;;  %v708_v1 = vsel %vm705_vm4, %v706_v45, %v707_v43  ;;  %v4344_v3 = vld [vmem:[#allocation7 + $0x180] sm:$0xff]   ;;  %v4346_v4 = vld [vmem:[#allocation7 + $0x188] sm:$0xff]   ;;  %v4348_v6 = vld [vmem:[#allocation7 + $0x190] sm:$0xff]   ;;  %p4587_p7 = pnand %p4586_p3, %p4580_p8 }
  0x66   : > { %v4345_v5 = vld [vmem:[#allocation7 + $0x148] sm:$0xff]   ;;  %v4347_v7 = vld [vmem:[#allocation7 + $0x150] sm:$0xff]   ;;  %v4350_v8 = vld [vmem:[#allocation7 + $0x198] sm:$0xff]  }
  0x67   : > { %v4349_v9 = vld [vmem:[#allocation7 + $0x158] sm:$0xff]   ;;  %v4353_v13 = vld [vmem:[#allocation7 + $0x168] sm:$0xff]  }
  0x68   : > { %3747 = vmatpush3.bf16.msra.mxu0 %v4310_v10  ;;  %3767 = vmatpush3.bf16.msra.mxu1 %v4311_v11  ;;  %v4352_v10 = vld [vmem:[#allocation7 + $0x1a0] sm:$0xff]   ;;  %v4358_v16 = vld [vmem:[#allocation7 + $0x1b8] sm:$0xff]  }
  0x69   : > { %3748 = vmatprep.subr.bf16.mxu0 %v4653_v0  ;;  %3768 = vmatprep.subr.bf16.mxu1 %v4653_v0  ;;  %v4351_v11 = vld [vmem:[#allocation7 + $0x160] sm:$0xff]  }
  0x6c   : > { %3749 = vmatpush3.bf16.msra.mxu0 %v4312_v14  ;;  %3769 = vmatpush3.bf16.msra.mxu1 %v4313_v15  ;;  %v4356_v14 = vld [vmem:[#allocation7 + $0x1b0] sm:$0xff]  }
  0x6d   : > { %3750 = vmatprep.subr.bf16.mxu0 %v4653_v0  ;;  %3770 = vmatprep.subr.bf16.mxu1 %v4653_v0  ;;  %v4355_v15 = vld [vmem:[#allocation7 + $0x170] sm:$0xff]  }
  0x70   : > { %3751 = vmatpush3.bf16.msra.mxu0 %v4314_v17  ;;  %3771 = vmatpush3.bf16.msra.mxu1 %v4315_v21  ;;  %v4357_v17 = vld [vmem:[#allocation7 + $0x178] sm:$0xff]  }
  0x71   : > { %3752 = vmatprep.subr.bf16.mxu0 %v4653_v0  ;;  %3772 = vmatprep.subr.bf16.mxu1 %v4653_v0 }
  0x74   : > { %3753 = vmatpush3.bf16.msra.mxu0 %v4316_v22  ;;  %3773 = vmatpush3.bf16.msra.mxu1 %v4317_v24 }
  0x75   : > { %3778 = vmatprep.subr.bf16.mxu0 %v4653_v0  ;;  %3798 = vmatprep.subr.bf16.mxu1 %v4653_v0 }
  0x77   : > { %3755 = vmatmul.mubr.bf16.vlgmr.msra.gmra.mrb[0].mxu0 %v266_v29  ;;  %3775 = vmatmul.mubr.bf16.vlgmr.msra.gmra.mrb[0].mxu1 %v362_v31 }
  0x78   : > { %3779 = vmatpush3.bf16.msra.mxu0 %v4319_v30  ;;  %3799 = vmatpush3.bf16.msra.mxu1 %v4320_v32 }
  0x79   : > { %3780 = vmatprep.subr.bf16.mxu0 %v4653_v0  ;;  %3800 = vmatprep.subr.bf16.mxu1 %v4653_v0 }
  0x7a   : > { %3794 = vmatprep.mubr.msk.bf16.mxu0 %vm4655_vm0, %v4653_v0  ;;  %3814 = vmatprep.mubr.msk.bf16.mxu1 %vm4655_vm0, %v4653_v0 }
  0x7c   : > { %3781 = vmatpush3.bf16.msra.mxu0 %v4321_v33  ;;  %3801 = vmatpush3.bf16.msra.mxu1 %v4322_v34 }
  0x7d   : > { %3782 = vmatprep.subr.bf16.mxu0 %v4653_v0  ;;  %3802 = vmatprep.subr.bf16.mxu1 %v4653_v0 }
  0x80   : > { %3783 = vmatpush3.bf16.msra.mxu0 %v4323_v36  ;;  %3803 = vmatpush3.bf16.msra.mxu1 %v4324_v37 }
  0x81   : > { %3784 = vmatprep.subr.bf16.mxu0 %v4653_v0  ;;  %3804 = vmatprep.subr.bf16.mxu1 %v4653_v0 }
  0x84   : > { %3785 = vmatpush3.bf16.msra.mxu0 %v4325_v39  ;;  %3805 = vmatpush3.bf16.msra.mxu1 %v4326_v41  ;;  %v3337_v41 = vld [vmem:[%s5236_s2] ss:$0 sm:$0xff] }
  0x85   : > { %3786 = vmatprep.subr.bf16.mxu0 %v4653_v0  ;;  %3806 = vmatprep.subr.bf16.mxu1 %v4653_v0 }
  0x88   : > { %3787 = vmatpush3.bf16.msra.mxu0 %v4327_v46  ;;  %3807 = vmatpush3.bf16.msra.mxu1 %v4328_v47 }
  0x89   : > { %3788 = vmatprep.subr.bf16.mxu0 %v4653_v0  ;;  %3808 = vmatprep.subr.bf16.mxu1 %v4653_v0 }
  0x8c   : > { %3789 = vmatpush3.bf16.msra.mxu0 %v4329_v48  ;;  %3809 = vmatpush3.bf16.msra.mxu1 %v4330_v49  ;;  %v814_v49 = vld [vmem:[#allocation3] sm:$0x80] }
  0x8d   : > { %3790 = vmatprep.subr.bf16.mxu0 %v4653_v0  ;;  %3810 = vmatprep.subr.bf16.mxu1 %v4653_v0 }
  0x90   : > { %3791 = vmatpush3.bf16.msra.mxu0 %v4331_v50  ;;  %3811 = vmatpush3.bf16.msra.mxu1 %v4332_v51 }
  0x91   : > { %3792 = vmatprep.subr.bf16.mxu0 %v4653_v0  ;;  %3812 = vmatprep.subr.bf16.mxu1 %v4653_v0 }
  0x94   : > { %3793 = vmatpush3.bf16.msra.mxu0 %v4333_v52  ;;  %3813 = vmatpush3.bf16.msra.mxu1 %v4334_v53  ;;  %v852_v53 = vshrl.u32 %v814_v49, 16 }
  0x95   : > { %3818 = vmatprep.subr.bf16.mxu0 %v4653_v0  ;;  %3838 = vmatprep.subr.bf16.mxu1 %v4653_v0 }
  0x97   : > { %3795 = vmatmul.mubr.bf16.vlgmr.msra.gmra.mrb[4].mxu0 %v4853_v12  ;;  %3815 = vmatmul.mubr.bf16.vlgmr.msra.gmra.mrb[4].mxu1 %v592_v56  ;;  %v4354_v12 = vld [vmem:[#allocation7 + $0x1a8] sm:$0xff]  }
  0x98   : > { %3819 = vmatpush3.bf16.msra.mxu0 %v4335_v55  ;;  %3834 = vmatprep.mubr.msk.bf16.mxu0 %vm4655_vm0, %v4653_v0  ;;  %v854_v55 = vrot.slane %v852_v53, 7 }
  0x99   : > { %3820 = vmatprep.subr.bf16.mxu0 %v4653_v0  ;;  %3854 = vmatprep.mubr.msk.bf16.mxu1 %vm4655_vm0, %v4653_v0 }
  0x9a   : > { %3839 = vmatpush3.bf16.msra.mxu1 %v4344_v3 }
  0x9b   : > { %3840 = vmatprep.subr.bf16.mxu1 %v4653_v0 }
  0x9c   : > { %3821 = vmatpush3.bf16.msra.mxu0 %v4336_v57 }
  0x9d   : > { %3822 = vmatprep.subr.bf16.mxu0 %v4653_v0 }
  0x9e   : > { %3841 = vmatpush3.bf16.msra.mxu1 %v4346_v4  ;;  %v4361_v4 = vld [vmem:[#allocation7 + $0x208] sm:$0xff]  }
  0x9f   : > { %3842 = vmatprep.subr.bf16.mxu1 %v4653_v0 }
  0xa0   : > { %3823 = vmatpush3.bf16.msra.mxu0 %v4337_v58 }
  0xa1   : > { %3824 = vmatprep.subr.bf16.mxu0 %v4653_v0 }
  0xa2   : > { %3843 = vmatpush3.bf16.msra.mxu1 %v4348_v6  ;;  %v4363_v6 = vld [vmem:[#allocation7 + $0x210] sm:$0xff]  }
  0xa3   : > { %3844 = vmatprep.subr.bf16.mxu1 %v4653_v0 }
  0xa4   : > { %3825 = vmatpush3.bf16.msra.mxu0 %v4338_v59  ;;  %v4360_v59 = vld [vmem:[#allocation7 + $0x1c0] sm:$0xff]  }
  0xa5   : > { %3826 = vmatprep.subr.bf16.mxu0 %v4653_v0 }
  0xa6   : > { %3845 = vmatpush3.bf16.msra.mxu1 %v4350_v8  ;;  %v4365_v8 = vld [vmem:[#allocation7 + $0x218] sm:$0xff]  }
  0xa7   : > { %3846 = vmatprep.subr.bf16.mxu1 %v4653_v0 }
  0xa8   : > { %3827 = vmatpush3.bf16.msra.mxu0 %v4339_v60  ;;  %v955_v60 = vrot.slane %v814_v49, 7  ;;  %v4398_v49 = vld [vmem:[#allocation7 + $0x2f8] sm:$0xff]  }
  0xa9   : > { %3828 = vmatprep.subr.bf16.mxu0 %v4653_v0 }
  0xaa   : > { %3847 = vmatpush3.bf16.msra.mxu1 %v4352_v10  ;;  %v4367_v10 = vld [vmem:[#allocation7 + $0x220] sm:$0xff]  }
  0xab   : > { %3848 = vmatprep.subr.bf16.mxu1 %v4653_v0 }
  0xac   : > { %3829 = vmatpush3.bf16.msra.mxu0 %v4340_v61 }
  0xad   : > { %3830 = vmatprep.subr.bf16.mxu0 %v4653_v0 }
  0xae   : > { %3849 = vmatpush3.bf16.msra.mxu1 %v4354_v12  ;;  %v4369_v12 = vld [vmem:[#allocation7 + $0x228] sm:$0xff]  }
  0xaf   : > { %3850 = vmatprep.subr.bf16.mxu1 %v4653_v0 }
  0xb0   : > { %3831 = vmatpush3.bf16.msra.mxu0 %v4341_v62 }
  0xb1   : > { %3832 = vmatprep.subr.bf16.mxu0 %v4653_v0 }
  0xb2   : > { %3851 = vmatpush3.bf16.msra.mxu1 %v4356_v14  ;;  %v1157_v14 = vld [vmem:[#allocation3 + $0x10] sm:$0x1] }
  0xb3   : > { %3852 = vmatprep.subr.bf16.mxu1 %v4653_v0 }
  0xb4   : > { %3833 = vmatpush3.bf16.msra.mxu0 %v4342_v63 }
  0xb5   : > { %3858 = vmatprep.subr.bf16.mxu0 %v4653_v0 }
  0xb6   : > { %3853 = vmatpush3.bf16.msra.mxu1 %v4358_v16  ;;  %v4374_v16 = vld [vmem:[#allocation7 + $0x1f8] sm:$0xff]  }
  0xb7   : > { %3835 = vmatmul.mubr.bf16.vlgmr.msra.gmra.mrb[8].mxu0 %v708_v1  ;;  %3878 = vmatprep.subr.bf16.mxu1 %v4653_v0  ;;  %v4359_v1 = vld [vmem:[#allocation7 + $0x200] sm:$0xff]  }
  0xb8   : > { %3874 = vmatprep.mubr.msk.bf16.mxu0 %vm4655_vm0, %v4653_v0  ;;  %3859 = vmatpush3.bf16.msra.mxu0 %v4343_v2  ;;  %v4362_v2 = vld [vmem:[#allocation7 + $0x1c8] sm:$0xff]  }
  0xb9   : > { %3860 = vmatprep.subr.bf16.mxu0 %v4653_v0 }
  0xbc   : > { %3861 = vmatpush3.bf16.msra.mxu0 %v4345_v5  ;;  %v4364_v5 = vld [vmem:[#allocation7 + $0x1d0] sm:$0xff]  }
  0xbd   : > { %3862 = vmatprep.subr.bf16.mxu0 %v4653_v0 }
  0xc0   : > { %3863 = vmatpush3.bf16.msra.mxu0 %v4347_v7  ;;  %v4366_v7 = vld [vmem:[#allocation7 + $0x1d8] sm:$0xff]  }
  0xc1   : > { %3864 = vmatprep.subr.bf16.mxu0 %v4653_v0 }
  0xc4   : > { %3865 = vmatpush3.bf16.msra.mxu0 %v4349_v9  ;;  %v4368_v9 = vld [vmem:[#allocation7 + $0x1e0] sm:$0xff]  }
  0xc5   : > { %3866 = vmatprep.subr.bf16.mxu0 %v4653_v0 }
  0xc8   : > { %3867 = vmatpush3.bf16.msra.mxu0 %v4351_v11  ;;  %v4370_v11 = vld [vmem:[#allocation7 + $0x1e8] sm:$0xff]  }
  0xc9   : > { %3868 = vmatprep.subr.bf16.mxu0 %v4653_v0 }
  0xcc   : > { %3869 = vmatpush3.bf16.msra.mxu0 %v4353_v13  ;;  %v4372_v13 = vld [vmem:[#allocation7 + $0x1f0] sm:$0xff]  }
  0xcd   : > { %3870 = vmatprep.subr.bf16.mxu0 %v4653_v0 }
  0xd0   : > { %3871 = vmatpush3.bf16.msra.mxu0 %v4355_v15  ;;  %v4371_v15 = vld [vmem:[#allocation7 + $0x230] sm:$0xff]  }
  0xd1   : > { %3872 = vmatprep.subr.bf16.mxu0 %v4653_v0 }
  0xd4   : > { %3873 = vmatpush3.bf16.msra.mxu0 %v4357_v17 }
  0xd5   : > { %3898 = vmatprep.subr.bf16.mxu0 %v4653_v0 }
 0x14a   : > { %v350_v18 = vpop.f32.mrb[0].mxu0  ;;  %v446_v19 = vpop.f32.mrb[0].mxu1 }
 0x14b   : > { %v3756_v20 = vpop.f32.mrb[1].mxu0  ;;  %v447_v21 = vadd.f32 %v446_v19, %v350_v18  ;;  %v3776_v22 = vpop.f32.mrb[1].mxu1  ;;  %v1183_v18 = vshll.u32 %v1157_v14, 16  ;;  %v4373_v19 = vld [vmem:[#allocation7 + $0x238] sm:$0xff]  }
 0x14c   : > { %v353_v23 = vpop.f32.mrb[2].mxu0  ;;  %v449_v24 = vpop.f32.mrb[2].mxu1  ;;  %v4375_v20 = vld [vmem:[#allocation7 + $0x240] sm:$0xff]  }
 0x14d   : > { %v3757_v25 = vpop.f32.mrb[3].mxu0  ;;  %v450_v26 = vadd.f32 %v449_v24, %v353_v23  ;;  %v3777_v27 = vpop.f32.mrb[3].mxu1  ;;  %v1185_v22 = vrot.slane %v1183_v18, 1  ;;  %v4376_v23 = vld [vmem:[#allocation7 + $0x248] sm:$0xff]  }
 0x14e   : > { %v4377_v25 = vld [vmem:[#allocation7 + $0x250] sm:$0xff]   ;;  %v4379_v27 = vld [vmem:[#allocation7 + $0x260] sm:$0xff]  }
 0x16a   : > { %v552_v28 = vpop.f32.mrb[4].mxu0  ;;  %v676_v31 = vpop.f32.mrb[4].mxu1 }
 0x16b   : > { %v559_v29 = vadd.f32 %v552_v28, %v447_v21  ;;  %v3796_v30 = vpop.f32.mrb[5].mxu0  ;;  %v3816_v33 = vpop.f32.mrb[5].mxu1  ;;  %v4380_v28 = vld [vmem:[#allocation7 + $0x268] sm:$0xff]  }
 0x16c   : > { %v555_v32 = vpop.f32.mrb[6].mxu0  ;;  %v679_v37 = vpop.f32.mrb[6].mxu1  ;;  %v1300_v33 = vrot.slane %v1157_v14, 1 }
 0x16d   : > { %v560_v34 = vadd.f32 %v555_v32, %v450_v26  ;;  %v683_v35 = vadd.f32 %v676_v31, %v559_v29  ;;  %v3797_v36 = vpop.f32.mrb[7].mxu0  ;;  %v3817_v38 = vpop.f32.mrb[7].mxu1  ;;  %v4378_v26 = vld [vmem:[#allocation7 + $0x258] sm:$0xff]   ;;  %v4381_v29 = vld [vmem:[#allocation7 + $0x270] sm:$0xff]  }
 0x16e   : > { %v4382_v31 = vld [vmem:[#allocation7 + $0x278] sm:$0xff]   ;;  %v4384_v36 = vld [vmem:[#allocation7 + $0x2c0] sm:$0xff]   ;;  %v4385_v38 = vld [vmem:[#allocation7 + $0x288] sm:$0xff]  }
 0x16f   : > { %v684_v39 = vadd.f32 %v679_v37, %v560_v34  ;;  %v4386_v37 = vld [vmem:[#allocation7 + $0x2c8] sm:$0xff]  }
 0x18a   : > { %v792_v40 = vpop.f32.mrb[8].mxu0 }
 0x18b   : > { %v799_v42 = vadd.f32 %v792_v40, %v683_v35  ;;  %v3836_v43 = vpop.f32.mrb[9].mxu0  ;;  %v4383_v35 = vld [vmem:[#allocation7 + $0x280] sm:$0xff]   ;;  %v4387_v40 = vld [vmem:[#allocation7 + $0x290] sm:$0xff]  }
 0x18c   : > { %v795_v44 = vpop.f32.mrb[10].mxu0  ;;  %v4392_v43 = vld [vmem:[#allocation7 + $0x2e0] sm:$0xff]  }
 0x18d   : > { %v808_v45 = vadd.f32 %v3337_v41, %v799_v42  ;;  %v800_v46 = vadd.f32 %v795_v44, %v684_v39  ;;  %v3837_v47 = vpop.f32.mrb[11].mxu0  ;;  %v4388_v39 = vld [vmem:[#allocation7 + $0x2d0] sm:$0xff]   ;;  %v4389_v42 = vld [vmem:[#allocation7 + $0x298] sm:$0xff]   ;;  %v4391_v44 = vld [vmem:[#allocation7 + $0x2a0] sm:$0xff]  }
 0x18e   : > { %v4396_v47 = vld [vmem:[#allocation7 + $0x2f0] sm:$0xff]  }
 0x18f   : > { %v809_v48 = vadd.f32 %v3337_v41, %v800_v46  ;;  %4503 = vtanh.f32 %v808_v45  ;;  %v4390_v41 = vld [vmem:[#allocation7 + $0x2d8] sm:$0xff]   ;;  %v4394_v45 = vld [vmem:[#allocation7 + $0x2e8] sm:$0xff]  }
 0x190   : > { %v4393_v46 = vld [vmem:[#allocation7 + $0x2a8] sm:$0xff]  }
 0x191   : > { %4505 = vtanh.f32 %v809_v48  ;;  %v4395_v48 = vld [vmem:[#allocation7 + $0x2b0] sm:$0xff]  }
 0x199   : > { %v4504_v50 = vpop.eup %4503 }
 0x19b   : > { %v4506_v51 = vpop.eup %4505 }
 0x19c   : > { %v4937_v52 = vpack.c.bf16 %v4506_v51, %v4504_v50  ;;  %v4397_v50 = vld [vmem:[#allocation7 + $0x2b8] sm:$0xff]  }
 0x19e   : > { %813 = vst [vmem:[#allocation3 + $0x8] sm:$0xff] %v4937_v52  ;;  %v856_v54 = vshrl.u32 %v4937_v52, 16  ;;  %v859_v57 = vshll.u32 %v4937_v52, 16 }
 0x1a0   : > { %v858_v56 = vrot.slane %v856_v54, 7  ;;  %v1180_v17 = vrot.slane %v859_v57, 1 }
 0x1a2   : > { %v861_v58 = vor.u32 %v859_v57, %v858_v56  ;;  %v1181_v21 = vor.u32 %v1180_v17, %v856_v54 }
 0x1a4   : > { %v862_v61 = vsel %vm254_vm1, %v854_v55, %v861_v58  ;;  %v1186_v24 = vsel %vm580_vm3, %v1181_v21, %v1185_v22 }
 0x1a5   : > { %v815_v62 = vld [vmem:[#allocation3 + $0x8] sm:$0x7f]  ;;  %3855 = vmatmul.mubr.bf16.vlgmr.msra.gmra.mrb[8].mxu1 %v862_v61 }
 0x1a6   : > { %v956_v63 = vrot.slane %v815_v62, 7  ;;  %3879 = vmatpush3.bf16.msra.mxu1 %v4360_v59  ;;  %3894 = vmatprep.mubr.msk.bf16.mxu1 %vm4655_vm0, %v4653_v0  ;;  %v1279_v30 = vld [vmem:[#allocation3 + $0x8] sm:$0xfe] }
 0x1a7   : > { %3880 = vmatprep.subr.bf16.mxu1 %v4653_v0  ;;  %v1299_v32 = vrot.slane %v1279_v30, 1 }
 0x1a8   : > { %v957_v3 = vsel %vm359_vm2, %v955_v60, %v956_v63 }
 0x1a9   : > { %3875 = vmatmul.mubr.bf16.vlgmr.msra.gmra.mrb[12].mxu0 %v957_v3  ;;  %v1301_v34 = vsel %vm705_vm4, %v1299_v32, %v1300_v33 }
 0x1aa   : > { %3899 = vmatpush3.bf16.msra.mxu0 %v4359_v1  ;;  %3881 = vmatpush3.bf16.msra.mxu1 %v4362_v2 }
 0x1ab   : > { %3900 = vmatprep.subr.bf16.mxu0 %v4653_v0  ;;  %3882 = vmatprep.subr.bf16.mxu1 %v4653_v0 }
 0x1ac   : > { %3914 = vmatprep.mubr.msk.bf16.mxu0 %vm4655_vm0, %v4653_v0 }
 0x1ae   : > { %3901 = vmatpush3.bf16.msra.mxu0 %v4361_v4  ;;  %3883 = vmatpush3.bf16.msra.mxu1 %v4364_v5 }
 0x1af   : > { %3902 = vmatprep.subr.bf16.mxu0 %v4653_v0  ;;  %3884 = vmatprep.subr.bf16.mxu1 %v4653_v0 }
 0x1b2   : > { %3903 = vmatpush3.bf16.msra.mxu0 %v4363_v6  ;;  %3885 = vmatpush3.bf16.msra.mxu1 %v4366_v7 }
 0x1b3   : > { %3904 = vmatprep.subr.bf16.mxu0 %v4653_v0  ;;  %3886 = vmatprep.subr.bf16.mxu1 %v4653_v0 }
 0x1b6   : > { %3905 = vmatpush3.bf16.msra.mxu0 %v4365_v8  ;;  %3887 = vmatpush3.bf16.msra.mxu1 %v4368_v9 }
 0x1b7   : > { %3906 = vmatprep.subr.bf16.mxu0 %v4653_v0  ;;  %3888 = vmatprep.subr.bf16.mxu1 %v4653_v0 }
 0x1ba   : > { %3907 = vmatpush3.bf16.msra.mxu0 %v4367_v10  ;;  %3889 = vmatpush3.bf16.msra.mxu1 %v4370_v11  ;;  %v3379_v11 = vld [vmem:[%s5236_s2 + $0x1] ss:$0 sm:$0xff] }
 0x1bb   : > { %3908 = vmatprep.subr.bf16.mxu0 %v4653_v0  ;;  %3890 = vmatprep.subr.bf16.mxu1 %v4653_v0 }
 0x1be   : > { %3909 = vmatpush3.bf16.msra.mxu0 %v4369_v12  ;;  %3891 = vmatpush3.bf16.msra.mxu1 %v4372_v13 }
 0x1bf   : > { %3910 = vmatprep.subr.bf16.mxu0 %v4653_v0  ;;  %3892 = vmatprep.subr.bf16.mxu1 %v4653_v0 }
 0x1c2   : > { %3911 = vmatpush3.bf16.msra.mxu0 %v4371_v15  ;;  %3893 = vmatpush3.bf16.msra.mxu1 %v4374_v16 }
 0x1c3   : > { %3912 = vmatprep.subr.bf16.mxu0 %v4653_v0  ;;  %3918 = vmatprep.subr.bf16.mxu1 %v4653_v0 }
 0x1c5   : > { %3895 = vmatmul.mubr.bf16.vlgmr.msra.gmra.mrb[12].mxu1 %v4937_v52 }
 0x1c6   : > { %3913 = vmatpush3.bf16.msra.mxu0 %v4373_v19  ;;  %3919 = vmatpush3.bf16.msra.mxu1 %v4375_v20  ;;  %v1408_v19 = vld [vmem:[#allocation2] sm:$0x80] }
 0x1c7   : > { %3920 = vmatprep.subr.bf16.mxu1 %v4653_v0  ;;  %3934 = vmatprep.mubr.msk.bf16.mxu1 %vm4655_vm0, %v4653_v0  ;;  %v1549_v30 = vrot.slane %v1408_v19, 7 }
 0x1c8   : > { %3938 = vmatprep.subr.bf16.mxu0 %v4653_v0 }
 0x1c9   : > { %3915 = vmatmul.mubr.bf16.vlgmr.msra.gmra.mrb[16].mxu0 %v1186_v24 }
 0x1ca   : > { %3921 = vmatpush3.bf16.msra.mxu1 %v4376_v23  ;;  %3954 = vmatprep.mubr.msk.bf16.mxu0 %vm4655_vm0, %v4653_v0  ;;  %v1446_v23 = vshrl.u32 %v1408_v19, 16  ;;  %v4438_v19 = vld [vmem:[#allocation7 + $0x438] sm:$0xff]  }
 0x1cb   : > { %3922 = vmatprep.subr.bf16.mxu1 %v4653_v0  ;;  %3939 = vmatpush3.bf16.msra.mxu0 %v4384_v36 }
 0x1cc   : > { %3940 = vmatprep.subr.bf16.mxu0 %v4653_v0 }
 0x1ce   : > { %3923 = vmatpush3.bf16.msra.mxu1 %v4377_v25  ;;  %v1448_v25 = vrot.slane %v1446_v23, 7 }
 0x1cf   : > { %3924 = vmatprep.subr.bf16.mxu1 %v4653_v0  ;;  %3941 = vmatpush3.bf16.msra.mxu0 %v4386_v37  ;;  %v4401_v37 = vld [vmem:[#allocation7 + $0x348] sm:$0xff]  }
 0x1d0   : > { %3942 = vmatprep.subr.bf16.mxu0 %v4653_v0 }
 0x1d2   : > { %3925 = vmatpush3.bf16.msra.mxu1 %v4378_v26 }
 0x1d3   : > { %3926 = vmatprep.subr.bf16.mxu1 %v4653_v0  ;;  %3943 = vmatpush3.bf16.msra.mxu0 %v4388_v39  ;;  %v4403_v39 = vld [vmem:[#allocation7 + $0x350] sm:$0xff]  }
 0x1d4   : > { %3944 = vmatprep.subr.bf16.mxu0 %v4653_v0 }
 0x1d6   : > { %3927 = vmatpush3.bf16.msra.mxu1 %v4379_v27 }
 0x1d7   : > { %3928 = vmatprep.subr.bf16.mxu1 %v4653_v0  ;;  %3945 = vmatpush3.bf16.msra.mxu0 %v4390_v41  ;;  %v4405_v41 = vld [vmem:[#allocation7 + $0x358] sm:$0xff]  }
 0x1d8   : > { %3946 = vmatprep.subr.bf16.mxu0 %v4653_v0 }
 0x1da   : > { %3929 = vmatpush3.bf16.msra.mxu1 %v4380_v28 }
 0x1db   : > { %3930 = vmatprep.subr.bf16.mxu1 %v4653_v0  ;;  %3947 = vmatpush3.bf16.msra.mxu0 %v4392_v43  ;;  %v4407_v43 = vld [vmem:[#allocation7 + $0x360] sm:$0xff]  }
 0x1dc   : > { %3948 = vmatprep.subr.bf16.mxu0 %v4653_v0 }
 0x1de   : > { %3931 = vmatpush3.bf16.msra.mxu1 %v4381_v29  ;;  %v4400_v29 = vld [vmem:[#allocation7 + $0x300] sm:$0xff]  }
 0x1df   : > { %3932 = vmatprep.subr.bf16.mxu1 %v4653_v0  ;;  %3949 = vmatpush3.bf16.msra.mxu0 %v4394_v45  ;;  %v4409_v45 = vld [vmem:[#allocation7 + $0x368] sm:$0xff]  }
 0x1e0   : > { %3950 = vmatprep.subr.bf16.mxu0 %v4653_v0 }
 0x1e2   : > { %3933 = vmatpush3.bf16.msra.mxu1 %v4382_v31 }
 0x1e3   : > { %3958 = vmatprep.subr.bf16.mxu1 %v4653_v0  ;;  %3951 = vmatpush3.bf16.msra.mxu0 %v4396_v47  ;;  %v1751_v47 = vld [vmem:[#allocation2 + $0x10] sm:$0x1] }
 0x1e4   : > { %3952 = vmatprep.subr.bf16.mxu0 %v4653_v0 }
 0x1e5   : > { %3935 = vmatmul.mubr.bf16.vlgmr.msra.gmra.mrb[16].mxu1 %v1301_v34  ;;  %v4399_v34 = vld [vmem:[#allocation7 + $0x340] sm:$0xff]  }
 0x1e6   : > { %3974 = vmatprep.mubr.msk.bf16.mxu1 %vm4655_vm0, %v4653_v0  ;;  %3959 = vmatpush3.bf16.msra.mxu1 %v4383_v35  ;;  %v4402_v35 = vld [vmem:[#allocation7 + $0x308] sm:$0xff]  }
 0x1e7   : > { %3960 = vmatprep.subr.bf16.mxu1 %v4653_v0  ;;  %3953 = vmatpush3.bf16.msra.mxu0 %v4398_v49  ;;  %v4414_v49 = vld [vmem:[#allocation7 + $0x338] sm:$0xff]  }
 0x1e8   : > { %3978 = vmatprep.subr.bf16.mxu0 %v4653_v0 }
 0x1ea   : > { %3961 = vmatpush3.bf16.msra.mxu1 %v4385_v38  ;;  %v4404_v38 = vld [vmem:[#allocation7 + $0x310] sm:$0xff]  }
 0x1eb   : > { %3962 = vmatprep.subr.bf16.mxu1 %v4653_v0 }
 0x1ee   : > { %3963 = vmatpush3.bf16.msra.mxu1 %v4387_v40  ;;  %v4406_v40 = vld [vmem:[#allocation7 + $0x318] sm:$0xff]  }
 0x1ef   : > { %3964 = vmatprep.subr.bf16.mxu1 %v4653_v0 }
 0x1f2   : > { %3965 = vmatpush3.bf16.msra.mxu1 %v4389_v42  ;;  %v4408_v42 = vld [vmem:[#allocation7 + $0x320] sm:$0xff]  }
 0x1f3   : > { %3966 = vmatprep.subr.bf16.mxu1 %v4653_v0 }
 0x1f6   : > { %3967 = vmatpush3.bf16.msra.mxu1 %v4391_v44  ;;  %v4410_v44 = vld [vmem:[#allocation7 + $0x328] sm:$0xff]  }
 0x1f7   : > { %3968 = vmatprep.subr.bf16.mxu1 %v4653_v0 }
 0x1fa   : > { %3969 = vmatpush3.bf16.msra.mxu1 %v4393_v46  ;;  %v4412_v46 = vld [vmem:[#allocation7 + $0x330] sm:$0xff]  }
 0x1fb   : > { %3970 = vmatprep.subr.bf16.mxu1 %v4653_v0 }
 0x1fe   : > { %3971 = vmatpush3.bf16.msra.mxu1 %v4395_v48  ;;  %v4411_v48 = vld [vmem:[#allocation7 + $0x370] sm:$0xff]  }
 0x1ff   : > { %3972 = vmatprep.subr.bf16.mxu1 %v4653_v0 }
 0x202   : > { %3973 = vmatpush3.bf16.msra.mxu1 %v4397_v50 }
 0x203   : > { %3998 = vmatprep.subr.bf16.mxu1 %v4653_v0 }
 0x278   : > { %v946_v51 = vpop.f32.mrb[8].mxu1 }
 0x279   : > { %v3856_v52 = vpop.f32.mrb[9].mxu1 }
 0x27a   : > { %v949_v53 = vpop.f32.mrb[10].mxu1  ;;  %v4413_v52 = vld [vmem:[#allocation7 + $0x378] sm:$0xff]  }
 0x27b   : > { %v3857_v54 = vpop.f32.mrb[11].mxu1 }
 0x27c   : > { %v1041_v55 = vpop.f32.mrb[12].mxu0 }
 0x27d   : > { %v3876_v56 = vpop.f32.mrb[13].mxu0  ;;  %v1042_v57 = vadd.f32 %v1041_v55, %v946_v51  ;;  %v1777_v51 = vshll.u32 %v1751_v47, 16 }
 0x27e   : > { %v1044_v58 = vpop.f32.mrb[14].mxu0  ;;  %v4416_v56 = vld [vmem:[#allocation7 + $0x388] sm:$0xff]  }
 0x27f   : > { %v3877_v59 = vpop.f32.mrb[15].mxu0  ;;  %v1045_v60 = vadd.f32 %v1044_v58, %v949_v53  ;;  %v4415_v53 = vld [vmem:[#allocation7 + $0x380] sm:$0xff]   ;;  %v1779_v55 = vrot.slane %v1777_v51, 1  ;;  %v4417_v58 = vld [vmem:[#allocation7 + $0x390] sm:$0xff]  }
 0x280   : > { %v4418_v59 = vld [vmem:[#allocation7 + $0x398] sm:$0xff]  }
 0x298   : > { %v1147_v61 = vpop.f32.mrb[12].mxu1 }
 0x299   : > { %v1154_v62 = vadd.f32 %v1147_v61, %v1042_v57  ;;  %v3896_v63 = vpop.f32.mrb[13].mxu1  ;;  %v4420_v61 = vld [vmem:[#allocation7 + $0x3a8] sm:$0xff]  }
 0x29a   : > { %v1150_v1 = vpop.f32.mrb[14].mxu1 }
 0x29b   : > { %v1155_v2 = vadd.f32 %v1150_v1, %v1045_v60  ;;  %v3897_v3 = vpop.f32.mrb[15].mxu1  ;;  %v4419_v60 = vld [vmem:[#allocation7 + $0x3a0] sm:$0xff]   ;;  %v4422_v1 = vld [vmem:[#allocation7 + $0x3b8] sm:$0xff]  }
 0x29c   : > { %v1270_v4 = vpop.f32.mrb[16].mxu0  ;;  %v1894_v3 = vrot.slane %v1751_v47, 1 }
 0x29d   : > { %v3916_v5 = vpop.f32.mrb[17].mxu0  ;;  %v1277_v6 = vadd.f32 %v1270_v4, %v1154_v62  ;;  %v4421_v62 = vld [vmem:[#allocation7 + $0x3b0] sm:$0xff]  }
 0x29e   : > { %v1273_v7 = vpop.f32.mrb[18].mxu0  ;;  %v4423_v5 = vld [vmem:[#allocation7 + $0x3c0] sm:$0xff]  }
 0x29f   : > { %v3917_v8 = vpop.f32.mrb[19].mxu0  ;;  %v1278_v9 = vadd.f32 %v1273_v7, %v1155_v2  ;;  %v4426_v7 = vld [vmem:[#allocation7 + $0x408] sm:$0xff]  }
 0x2a0   : > { %v4425_v8 = vld [vmem:[#allocation7 + $0x3c8] sm:$0xff]  }
 0x2b8   : > { %v1385_v10 = vpop.f32.mrb[16].mxu1 }
 0x2b9   : > { %v1392_v12 = vadd.f32 %v1385_v10, %v1277_v6  ;;  %v3936_v13 = vpop.f32.mrb[17].mxu1  ;;  %v4424_v6 = vld [vmem:[#allocation7 + $0x400] sm:$0xff]   ;;  %v4427_v10 = vld [vmem:[#allocation7 + $0x3d0] sm:$0xff]  }
 0x2ba   : > { %v1388_v14 = vpop.f32.mrb[18].mxu1  ;;  %v4432_v13 = vld [vmem:[#allocation7 + $0x420] sm:$0xff]  }
 0x2bb   : > { %v1402_v15 = vadd.f32 %v3379_v11, %v1392_v12  ;;  %v1393_v16 = vadd.f32 %v1388_v14, %v1278_v9  ;;  %v3937_v17 = vpop.f32.mrb[19].mxu1  ;;  %v4428_v9 = vld [vmem:[#allocation7 + $0x410] sm:$0xff]   ;;  %v4429_v12 = vld [vmem:[#allocation7 + $0x3d8] sm:$0xff]   ;;  %v4431_v14 = vld [vmem:[#allocation7 + $0x3e0] sm:$0xff]  }
 0x2bc   : > { %v4436_v17 = vld [vmem:[#allocation7 + $0x430] sm:$0xff]  }
 0x2bd   : > { %v1403_v18 = vadd.f32 %v3379_v11, %v1393_v16  ;;  %4507 = vtanh.f32 %v1402_v15  ;;  %v4430_v11 = vld [vmem:[#allocation7 + $0x418] sm:$0xff]   ;;  %v4434_v15 = vld [vmem:[#allocation7 + $0x428] sm:$0xff]  }
 0x2be   : > { %v4433_v16 = vld [vmem:[#allocation7 + $0x3e8] sm:$0xff]  }
 0x2bf   : > { %4509 = vtanh.f32 %v1403_v18  ;;  %v4435_v18 = vld [vmem:[#allocation7 + $0x3f0] sm:$0xff]  }
 0x2c7   : > { %v4508_v20 = vpop.eup %4507 }
 0x2c9   : > { %v4510_v21 = vpop.eup %4509 }
 0x2ca   : > { %v5004_v22 = vpack.c.bf16 %v4510_v21, %v4508_v20  ;;  %v4437_v20 = vld [vmem:[#allocation7 + $0x3f8] sm:$0xff]  }
 0x2cc   : > { %1407 = vst [vmem:[#allocation2 + $0x8] sm:$0xff] %v5004_v22  ;;  %v1450_v24 = vshrl.u32 %v5004_v22, 16  ;;  %v1453_v27 = vshll.u32 %v5004_v22, 16 }
 0x2ce   : > { %v1452_v26 = vrot.slane %v1450_v24, 7  ;;  %v1774_v50 = vrot.slane %v1453_v27, 1 }
 0x2d0   : > { %v1455_v28 = vor.u32 %v1453_v27, %v1452_v26  ;;  %v1775_v54 = vor.u32 %v1774_v50, %v1450_v24 }
 0x2d2   : > { %v1456_v31 = vsel %vm254_vm1, %v1448_v25, %v1455_v28  ;;  %v1780_v57 = vsel %vm580_vm3, %v1775_v54, %v1779_v55 }
 0x2d3   : > { %v1409_v32 = vld [vmem:[#allocation2 + $0x8] sm:$0x7f]  ;;  %3955 = vmatmul.mubr.bf16.vlgmr.msra.gmra.mrb[20].mxu0 %v1456_v31 }
 0x2d4   : > { %v1550_v33 = vrot.slane %v1409_v32, 7  ;;  %3979 = vmatpush3.bf16.msra.mxu0 %v4400_v29  ;;  %3994 = vmatprep.mubr.msk.bf16.mxu0 %vm4655_vm0, %v4653_v0  ;;  %v1873_v63 = vld [vmem:[#allocation2 + $0x8] sm:$0xfe] }
 0x2d5   : > { %3980 = vmatprep.subr.bf16.mxu0 %v4653_v0  ;;  %v1893_v2 = vrot.slane %v1873_v63, 1 }
 0x2d6   : > { %v1551_v36 = vsel %vm359_vm2, %v1549_v30, %v1550_v33 }
 0x2d7   : > { %3975 = vmatmul.mubr.bf16.vlgmr.msra.gmra.mrb[20].mxu1 %v1551_v36  ;;  %v1895_v4 = vsel %vm705_vm4, %v1893_v2, %v1894_v3 }
 0x2d8   : > { %3999 = vmatpush3.bf16.msra.mxu1 %v4399_v34  ;;  %3981 = vmatpush3.bf16.msra.mxu0 %v4402_v35 }
 0x2d9   : > { %4000 = vmatprep.subr.bf16.mxu1 %v4653_v0  ;;  %3982 = vmatprep.subr.bf16.mxu0 %v4653_v0 }
 0x2da   : > { %4014 = vmatprep.mubr.msk.bf16.mxu1 %vm4655_vm0, %v4653_v0 }
 0x2dc   : > { %4001 = vmatpush3.bf16.msra.mxu1 %v4401_v37  ;;  %3983 = vmatpush3.bf16.msra.mxu0 %v4404_v38 }
 0x2dd   : > { %4002 = vmatprep.subr.bf16.mxu1 %v4653_v0  ;;  %3984 = vmatprep.subr.bf16.mxu0 %v4653_v0 }
 0x2e0   : > { %4003 = vmatpush3.bf16.msra.mxu1 %v4403_v39  ;;  %3985 = vmatpush3.bf16.msra.mxu0 %v4406_v40 }
 0x2e1   : > { %4004 = vmatprep.subr.bf16.mxu1 %v4653_v0  ;;  %3986 = vmatprep.subr.bf16.mxu0 %v4653_v0 }
 0x2e4   : > { %4005 = vmatpush3.bf16.msra.mxu1 %v4405_v41  ;;  %3987 = vmatpush3.bf16.msra.mxu0 %v4408_v42 }
 0x2e5   : > { %4006 = vmatprep.subr.bf16.mxu1 %v4653_v0  ;;  %3988 = vmatprep.subr.bf16.mxu0 %v4653_v0 }
 0x2e8   : > { %4007 = vmatpush3.bf16.msra.mxu1 %v4407_v43  ;;  %3989 = vmatpush3.bf16.msra.mxu0 %v4410_v44  ;;  %v3421_v44 = vld [vmem:[%s5236_s2 + $0x2] ss:$0 sm:$0xff] }
 0x2e9   : > { %4008 = vmatprep.subr.bf16.mxu1 %v4653_v0  ;;  %3990 = vmatprep.subr.bf16.mxu0 %v4653_v0 }
 0x2ec   : > { %4009 = vmatpush3.bf16.msra.mxu1 %v4409_v45  ;;  %3991 = vmatpush3.bf16.msra.mxu0 %v4412_v46 }
 0x2ed   : > { %4010 = vmatprep.subr.bf16.mxu1 %v4653_v0  ;;  %3992 = vmatprep.subr.bf16.mxu0 %v4653_v0 }
 0x2f0   : > { %4011 = vmatpush3.bf16.msra.mxu1 %v4411_v48  ;;  %3993 = vmatpush3.bf16.msra.mxu0 %v4414_v49 }
 0x2f1   : > { %4012 = vmatprep.subr.bf16.mxu1 %v4653_v0  ;;  %4018 = vmatprep.subr.bf16.mxu0 %v4653_v0 }
 0x2f3   : > { %3995 = vmatmul.mubr.bf16.vlgmr.msra.gmra.mrb[24].mxu0 %v5004_v22 }
 0x2f4   : > { %4013 = vmatpush3.bf16.msra.mxu1 %v4413_v52  ;;  %4019 = vmatpush3.bf16.msra.mxu0 %v4415_v53  ;;  %v2002_v52 = vld [vmem:[#allocation3] sm:$0x80] }
 0x2f5   : > { %4020 = vmatprep.subr.bf16.mxu0 %v4653_v0  ;;  %4034 = vmatprep.mubr.msk.bf16.mxu0 %vm4655_vm0, %v4653_v0  ;;  %v2143_v63 = vrot.slane %v2002_v52, 7 }
 0x2f6   : > { %4038 = vmatprep.subr.bf16.mxu1 %v4653_v0 }
 0x2f7   : > { %4015 = vmatmul.mubr.bf16.vlgmr.msra.gmra.mrb[24].mxu1 %v1780_v57 }
 0x2f8   : > { %4021 = vmatpush3.bf16.msra.mxu0 %v4416_v56  ;;  %4054 = vmatprep.mubr.msk.bf16.mxu1 %vm4655_vm0, %v4653_v0  ;;  %v2040_v56 = vshrl.u32 %v2002_v52, 16  ;;  %v4478_v52 = vld [vmem:[#allocation7 + $0x578] sm:$0xff]  }
 0x2f9   : > { %4022 = vmatprep.subr.bf16.mxu0 %v4653_v0  ;;  %4039 = vmatpush3.bf16.msra.mxu1 %v4424_v6 }
 0x2fa   : > { %4040 = vmatprep.subr.bf16.mxu1 %v4653_v0 }
 0x2fc   : > { %4023 = vmatpush3.bf16.msra.mxu0 %v4417_v58  ;;  %v2042_v58 = vrot.slane %v2040_v56, 7 }
 0x2fd   : > { %4024 = vmatprep.subr.bf16.mxu0 %v4653_v0  ;;  %4041 = vmatpush3.bf16.msra.mxu1 %v4426_v7  ;;  %v4441_v7 = vld [vmem:[#allocation7 + $0x488] sm:$0xff]  }
 0x2fe   : > { %4042 = vmatprep.subr.bf16.mxu1 %v4653_v0 }
 0x300   : > { %4025 = vmatpush3.bf16.msra.mxu0 %v4418_v59 }
 0x301   : > { %4026 = vmatprep.subr.bf16.mxu0 %v4653_v0  ;;  %4043 = vmatpush3.bf16.msra.mxu1 %v4428_v9  ;;  %v4443_v9 = vld [vmem:[#allocation7 + $0x490] sm:$0xff]  }
 0x302   : > { %4044 = vmatprep.subr.bf16.mxu1 %v4653_v0 }
 0x304   : > { %4027 = vmatpush3.bf16.msra.mxu0 %v4419_v60 }
 0x305   : > { %4028 = vmatprep.subr.bf16.mxu0 %v4653_v0  ;;  %4045 = vmatpush3.bf16.msra.mxu1 %v4430_v11  ;;  %v4445_v11 = vld [vmem:[#allocation7 + $0x498] sm:$0xff]  }
 0x306   : > { %4046 = vmatprep.subr.bf16.mxu1 %v4653_v0 }
 0x308   : > { %4029 = vmatpush3.bf16.msra.mxu0 %v4420_v61 }
 0x309   : > { %4030 = vmatprep.subr.bf16.mxu0 %v4653_v0  ;;  %4047 = vmatpush3.bf16.msra.mxu1 %v4432_v13  ;;  %v4447_v13 = vld [vmem:[#allocation7 + $0x4a0] sm:$0xff]  }
 0x30a   : > { %4048 = vmatprep.subr.bf16.mxu1 %v4653_v0 }
 0x30c   : > { %4031 = vmatpush3.bf16.msra.mxu0 %v4421_v62  ;;  %v4440_v62 = vld [vmem:[#allocation7 + $0x440] sm:$0xff]  }
 0x30d   : > { %4032 = vmatprep.subr.bf16.mxu0 %v4653_v0  ;;  %4049 = vmatpush3.bf16.msra.mxu1 %v4434_v15  ;;  %v4449_v15 = vld [vmem:[#allocation7 + $0x4a8] sm:$0xff]  }
 0x30e   : > { %4050 = vmatprep.subr.bf16.mxu1 %v4653_v0 }
 0x310   : > { %4033 = vmatpush3.bf16.msra.mxu0 %v4422_v1 }
 0x311   : > { %4058 = vmatprep.subr.bf16.mxu0 %v4653_v0  ;;  %4051 = vmatpush3.bf16.msra.mxu1 %v4436_v17  ;;  %v2345_v17 = vld [vmem:[#allocation3 + $0x10] sm:$0x1] }
 0x312   : > { %4052 = vmatprep.subr.bf16.mxu1 %v4653_v0 }
 0x313   : > { %4035 = vmatmul.mubr.bf16.vlgmr.msra.gmra.mrb[28].mxu0 %v1895_v4  ;;  %v4439_v4 = vld [vmem:[#allocation7 + $0x480] sm:$0xff]  }
 0x314   : > { %4074 = vmatprep.mubr.msk.bf16.mxu0 %vm4655_vm0, %v4653_v0  ;;  %4059 = vmatpush3.bf16.msra.mxu0 %v4423_v5  ;;  %v4442_v5 = vld [vmem:[#allocation7 + $0x448] sm:$0xff]  }
 0x315   : > { %4060 = vmatprep.subr.bf16.mxu0 %v4653_v0  ;;  %4053 = vmatpush3.bf16.msra.mxu1 %v4438_v19  ;;  %v4454_v19 = vld [vmem:[#allocation7 + $0x478] sm:$0xff]  }
 0x316   : > { %4078 = vmatprep.subr.bf16.mxu1 %v4653_v0 }
 0x318   : > { %4061 = vmatpush3.bf16.msra.mxu0 %v4425_v8  ;;  %v4444_v8 = vld [vmem:[#allocation7 + $0x450] sm:$0xff]  }
 0x319   : > { %4062 = vmatprep.subr.bf16.mxu0 %v4653_v0 }
 0x31c   : > { %4063 = vmatpush3.bf16.msra.mxu0 %v4427_v10  ;;  %v4446_v10 = vld [vmem:[#allocation7 + $0x458] sm:$0xff]  }
 0x31d   : > { %4064 = vmatprep.subr.bf16.mxu0 %v4653_v0 }
 0x320   : > { %4065 = vmatpush3.bf16.msra.mxu0 %v4429_v12  ;;  %v4448_v12 = vld [vmem:[#allocation7 + $0x460] sm:$0xff]  }
 0x321   : > { %4066 = vmatprep.subr.bf16.mxu0 %v4653_v0 }
 0x324   : > { %4067 = vmatpush3.bf16.msra.mxu0 %v4431_v14  ;;  %v4450_v14 = vld [vmem:[#allocation7 + $0x468] sm:$0xff]  }
 0x325   : > { %4068 = vmatprep.subr.bf16.mxu0 %v4653_v0 }
 0x328   : > { %4069 = vmatpush3.bf16.msra.mxu0 %v4433_v16  ;;  %v4452_v16 = vld [vmem:[#allocation7 + $0x470] sm:$0xff]  }
 0x329   : > { %4070 = vmatprep.subr.bf16.mxu0 %v4653_v0 }
 0x32c   : > { %4071 = vmatpush3.bf16.msra.mxu0 %v4435_v18  ;;  %v4451_v18 = vld [vmem:[#allocation7 + $0x4b0] sm:$0xff]  }
 0x32d   : > { %4072 = vmatprep.subr.bf16.mxu0 %v4653_v0 }
 0x330   : > { %4073 = vmatpush3.bf16.msra.mxu0 %v4437_v20 }
 0x331   : > { %4098 = vmatprep.subr.bf16.mxu0 %v4653_v0 }
 0x3a6   : > { %v1540_v21 = vpop.f32.mrb[20].mxu0 }
 0x3a7   : > { %v3956_v22 = vpop.f32.mrb[21].mxu0 }
 0x3a8   : > { %v1543_v23 = vpop.f32.mrb[22].mxu0  ;;  %v4453_v22 = vld [vmem:[#allocation7 + $0x4b8] sm:$0xff]  }
 0x3a9   : > { %v3957_v24 = vpop.f32.mrb[23].mxu0 }
 0x3aa   : > { %v1635_v25 = vpop.f32.mrb[20].mxu1 }
 0x3ab   : > { %v3976_v26 = vpop.f32.mrb[21].mxu1  ;;  %v1636_v27 = vadd.f32 %v1635_v25, %v1540_v21  ;;  %v2371_v21 = vshll.u32 %v2345_v17, 16 }
 0x3ac   : > { %v1638_v28 = vpop.f32.mrb[22].mxu1  ;;  %v4456_v26 = vld [vmem:[#allocation7 + $0x4c8] sm:$0xff]  }
 0x3ad   : > { %v3977_v29 = vpop.f32.mrb[23].mxu1  ;;  %v1639_v30 = vadd.f32 %v1638_v28, %v1543_v23  ;;  %v4455_v23 = vld [vmem:[#allocation7 + $0x4c0] sm:$0xff]   ;;  %v2373_v25 = vrot.slane %v2371_v21, 1  ;;  %v4457_v28 = vld [vmem:[#allocation7 + $0x4d0] sm:$0xff]  }
 0x3ae   : > { %v4458_v29 = vld [vmem:[#allocation7 + $0x4d8] sm:$0xff]  }
 0x3c6   : > { %v1741_v31 = vpop.f32.mrb[24].mxu0 }
 0x3c7   : > { %v1748_v32 = vadd.f32 %v1741_v31, %v1636_v27  ;;  %v3996_v33 = vpop.f32.mrb[25].mxu0  ;;  %v4460_v31 = vld [vmem:[#allocation7 + $0x4e8] sm:$0xff]  }
 0x3c8   : > { %v1744_v34 = vpop.f32.mrb[26].mxu0 }
 0x3c9   : > { %v1749_v35 = vadd.f32 %v1744_v34, %v1639_v30  ;;  %v3997_v36 = vpop.f32.mrb[27].mxu0  ;;  %v4459_v30 = vld [vmem:[#allocation7 + $0x4e0] sm:$0xff]   ;;  %v4462_v34 = vld [vmem:[#allocation7 + $0x4f8] sm:$0xff]  }
 0x3ca   : > { %v1864_v37 = vpop.f32.mrb[24].mxu1  ;;  %v2488_v36 = vrot.slane %v2345_v17, 1 }
 0x3cb   : > { %v4016_v38 = vpop.f32.mrb[25].mxu1  ;;  %v1871_v39 = vadd.f32 %v1864_v37, %v1748_v32  ;;  %v4461_v32 = vld [vmem:[#allocation7 + $0x4f0] sm:$0xff]  }
 0x3cc   : > { %v1867_v40 = vpop.f32.mrb[26].mxu1  ;;  %v4463_v38 = vld [vmem:[#allocation7 + $0x500] sm:$0xff]  }
 0x3cd   : > { %v4017_v41 = vpop.f32.mrb[27].mxu1  ;;  %v1872_v42 = vadd.f32 %v1867_v40, %v1749_v35  ;;  %v4466_v40 = vld [vmem:[#allocation7 + $0x548] sm:$0xff]  }
 0x3ce   : > { %v4465_v41 = vld [vmem:[#allocation7 + $0x508] sm:$0xff]  }
 0x3e6   : > { %v1979_v43 = vpop.f32.mrb[28].mxu0 }
 0x3e7   : > { %v1986_v45 = vadd.f32 %v1979_v43, %v1871_v39  ;;  %v4036_v46 = vpop.f32.mrb[29].mxu0  ;;  %v4464_v39 = vld [vmem:[#allocation7 + $0x540] sm:$0xff]   ;;  %v4467_v43 = vld [vmem:[#allocation7 + $0x510] sm:$0xff]  }
 0x3e8   : > { %v1982_v47 = vpop.f32.mrb[30].mxu0  ;;  %v4472_v46 = vld [vmem:[#allocation7 + $0x560] sm:$0xff]  }
 0x3e9   : > { %v1996_v48 = vadd.f32 %v3421_v44, %v1986_v45  ;;  %v1987_v49 = vadd.f32 %v1982_v47, %v1872_v42  ;;  %v4037_v50 = vpop.f32.mrb[31].mxu0  ;;  %v4468_v42 = vld [vmem:[#allocation7 + $0x550] sm:$0xff]   ;;  %v4469_v45 = vld [vmem:[#allocation7 + $0x518] sm:$0xff]   ;;  %v4471_v47 = vld [vmem:[#allocation7 + $0x520] sm:$0xff]  }
 0x3ea   : > { %v4476_v50 = vld [vmem:[#allocation7 + $0x570] sm:$0xff]  }
 0x3eb   : > { %v1997_v51 = vadd.f32 %v3421_v44, %v1987_v49  ;;  %4511 = vtanh.f32 %v1996_v48  ;;  %v4470_v44 = vld [vmem:[#allocation7 + $0x558] sm:$0xff]   ;;  %v4474_v48 = vld [vmem:[#allocation7 + $0x568] sm:$0xff]  }
 0x3ec   : > { %v4473_v49 = vld [vmem:[#allocation7 + $0x528] sm:$0xff]  }
 0x3ed   : > { %4513 = vtanh.f32 %v1997_v51  ;;  %v4475_v51 = vld [vmem:[#allocation7 + $0x530] sm:$0xff]  }
 0x3f5   : > { %v4512_v53 = vpop.eup %4511 }
 0x3f7   : > { %v4514_v54 = vpop.eup %4513 }
 0x3f8   : > { %v5071_v55 = vpack.c.bf16 %v4514_v54, %v4512_v53  ;;  %v4477_v53 = vld [vmem:[#allocation7 + $0x538] sm:$0xff]  }
 0x3fa   : > { %2001 = vst [vmem:[#allocation3 + $0x8] sm:$0xff] %v5071_v55  ;;  %v2044_v57 = vshrl.u32 %v5071_v55, 16  ;;  %v2047_v60 = vshll.u32 %v5071_v55, 16 }
 0x3fc   : > { %v2046_v59 = vrot.slane %v2044_v57, 7  ;;  %v2368_v20 = vrot.slane %v2047_v60, 1 }
 0x3fe   : > { %v2049_v61 = vor.u32 %v2047_v60, %v2046_v59  ;;  %v2369_v24 = vor.u32 %v2368_v20, %v2044_v57 }
 0x400   : > { %v2050_v1 = vsel %vm254_vm1, %v2042_v58, %v2049_v61  ;;  %v2374_v27 = vsel %vm580_vm3, %v2369_v24, %v2373_v25 }
 0x401   : > { %v2003_v2 = vld [vmem:[#allocation3 + $0x8] sm:$0x7f]  ;;  %4055 = vmatmul.mubr.bf16.vlgmr.msra.gmra.mrb[28].mxu1 %v2050_v1 }
 0x402   : > { %v2144_v3 = vrot.slane %v2003_v2, 7  ;;  %4079 = vmatpush3.bf16.msra.mxu1 %v4440_v62  ;;  %4094 = vmatprep.mubr.msk.bf16.mxu1 %vm4655_vm0, %v4653_v0  ;;  %v2467_v33 = vld [vmem:[#allocation3 + $0x8] sm:$0xfe] }
 0x403   : > { %4080 = vmatprep.subr.bf16.mxu1 %v4653_v0  ;;  %v2487_v35 = vrot.slane %v2467_v33, 1 }
 0x404   : > { %v2145_v6 = vsel %vm359_vm2, %v2143_v63, %v2144_v3 }
 0x405   : > { %4075 = vmatmul.mubr.bf16.vlgmr.msra.gmra.mrb[32].mxu0 %v2145_v6  ;;  %v2489_v37 = vsel %vm705_vm4, %v2487_v35, %v2488_v36 }
 0x406   : > { %4099 = vmatpush3.bf16.msra.mxu0 %v4439_v4  ;;  %4081 = vmatpush3.bf16.msra.mxu1 %v4442_v5 }
 0x407   : > { %4100 = vmatprep.subr.bf16.mxu0 %v4653_v0  ;;  %4082 = vmatprep.subr.bf16.mxu1 %v4653_v0 }
 0x408   : > { %4114 = vmatprep.mubr.msk.bf16.mxu0 %vm4655_vm0, %v4653_v0 }
 0x40a   : > { %4101 = vmatpush3.bf16.msra.mxu0 %v4441_v7  ;;  %4083 = vmatpush3.bf16.msra.mxu1 %v4444_v8 }
 0x40b   : > { %4102 = vmatprep.subr.bf16.mxu0 %v4653_v0  ;;  %4084 = vmatprep.subr.bf16.mxu1 %v4653_v0 }
 0x40e   : > { %4103 = vmatpush3.bf16.msra.mxu0 %v4443_v9  ;;  %4085 = vmatpush3.bf16.msra.mxu1 %v4446_v10 }
 0x40f   : > { %4104 = vmatprep.subr.bf16.mxu0 %v4653_v0  ;;  %4086 = vmatprep.subr.bf16.mxu1 %v4653_v0 }
 0x412   : > { %4105 = vmatpush3.bf16.msra.mxu0 %v4445_v11  ;;  %4087 = vmatpush3.bf16.msra.mxu1 %v4448_v12 }
 0x413   : > { %4106 = vmatprep.subr.bf16.mxu0 %v4653_v0  ;;  %4088 = vmatprep.subr.bf16.mxu1 %v4653_v0 }
 0x416   : > { %4107 = vmatpush3.bf16.msra.mxu0 %v4447_v13  ;;  %4089 = vmatpush3.bf16.msra.mxu1 %v4450_v14  ;;  %v3463_v14 = vld [vmem:[%s5236_s2 + $0x3] ss:$0 sm:$0xff] }
 0x417   : > { %4108 = vmatprep.subr.bf16.mxu0 %v4653_v0  ;;  %4090 = vmatprep.subr.bf16.mxu1 %v4653_v0 }
 0x41a   : > { %4109 = vmatpush3.bf16.msra.mxu0 %v4449_v15  ;;  %4091 = vmatpush3.bf16.msra.mxu1 %v4452_v16 }
 0x41b   : > { %4110 = vmatprep.subr.bf16.mxu0 %v4653_v0  ;;  %4092 = vmatprep.subr.bf16.mxu1 %v4653_v0 }
 0x41e   : > { %4111 = vmatpush3.bf16.msra.mxu0 %v4451_v18  ;;  %4093 = vmatpush3.bf16.msra.mxu1 %v4454_v19 }
 0x41f   : > { %4112 = vmatprep.subr.bf16.mxu0 %v4653_v0  ;;  %4118 = vmatprep.subr.bf16.mxu1 %v4653_v0 }
 0x421   : > { %4095 = vmatmul.mubr.bf16.vlgmr.msra.gmra.mrb[32].mxu1 %v5071_v55 }
 0x422   : > { %4113 = vmatpush3.bf16.msra.mxu0 %v4453_v22  ;;  %4119 = vmatpush3.bf16.msra.mxu1 %v4455_v23  ;;  %v2596_v22 = vld [vmem:[#allocation2] sm:$0x80] }
 0x423   : > { %4120 = vmatprep.subr.bf16.mxu1 %v4653_v0  ;;  %4134 = vmatprep.mubr.msk.bf16.mxu1 %vm4655_vm0, %v4653_v0  ;;  %v2737_v33 = vrot.slane %v2596_v22, 7 }
 0x424   : > { %4138 = vmatprep.subr.bf16.mxu0 %v4653_v0 }
 0x425   : > { %4115 = vmatmul.mubr.bf16.vlgmr.msra.gmra.mrb[36].mxu0 %v2374_v27 }
 0x426   : > { %4121 = vmatpush3.bf16.msra.mxu1 %v4456_v26  ;;  %4154 = vmatprep.mubr.msk.bf16.mxu0 %vm4655_vm0, %v4653_v0  ;;  %v2634_v26 = vshrl.u32 %v2596_v22, 16 }
 0x427   : > { %4122 = vmatprep.subr.bf16.mxu1 %v4653_v0  ;;  %4139 = vmatpush3.bf16.msra.mxu0 %v4464_v39 }
 0x428   : > { %4140 = vmatprep.subr.bf16.mxu0 %v4653_v0 }
 0x42a   : > { %4123 = vmatpush3.bf16.msra.mxu1 %v4457_v28  ;;  %v2636_v28 = vrot.slane %v2634_v26, 7 }
 0x42b   : > { %4124 = vmatprep.subr.bf16.mxu1 %v4653_v0  ;;  %4141 = vmatpush3.bf16.msra.mxu0 %v4466_v40  ;;  %v4481_v40 = vld [vmem:[#allocation7 + $0x5c8] sm:$0xff]  }
 0x42c   : > { %4142 = vmatprep.subr.bf16.mxu0 %v4653_v0 }
 0x42e   : > { %4125 = vmatpush3.bf16.msra.mxu1 %v4458_v29 }
 0x42f   : > { %4126 = vmatprep.subr.bf16.mxu1 %v4653_v0  ;;  %4143 = vmatpush3.bf16.msra.mxu0 %v4468_v42  ;;  %v4483_v42 = vld [vmem:[#allocation7 + $0x5d0] sm:$0xff]  }
 0x430   : > { %4144 = vmatprep.subr.bf16.mxu0 %v4653_v0 }
 0x432   : > { %4127 = vmatpush3.bf16.msra.mxu1 %v4459_v30 }
 0x433   : > { %4128 = vmatprep.subr.bf16.mxu1 %v4653_v0  ;;  %4145 = vmatpush3.bf16.msra.mxu0 %v4470_v44  ;;  %v4485_v44 = vld [vmem:[#allocation7 + $0x5d8] sm:$0xff]  }
 0x434   : > { %4146 = vmatprep.subr.bf16.mxu0 %v4653_v0 }
 0x436   : > { %4129 = vmatpush3.bf16.msra.mxu1 %v4460_v31 }
 0x437   : > { %4130 = vmatprep.subr.bf16.mxu1 %v4653_v0  ;;  %4147 = vmatpush3.bf16.msra.mxu0 %v4472_v46  ;;  %v4487_v46 = vld [vmem:[#allocation7 + $0x5e0] sm:$0xff]  }
 0x438   : > { %4148 = vmatprep.subr.bf16.mxu0 %v4653_v0 }
 0x43a   : > { %4131 = vmatpush3.bf16.msra.mxu1 %v4461_v32  ;;  %v4480_v32 = vld [vmem:[#allocation7 + $0x580] sm:$0xff]  }
 0x43b   : > { %4132 = vmatprep.subr.bf16.mxu1 %v4653_v0  ;;  %4149 = vmatpush3.bf16.msra.mxu0 %v4474_v48  ;;  %v4489_v48 = vld [vmem:[#allocation7 + $0x5e8] sm:$0xff]  }
 0x43c   : > { %4150 = vmatprep.subr.bf16.mxu0 %v4653_v0 }
 0x43e   : > { %4133 = vmatpush3.bf16.msra.mxu1 %v4462_v34 }
 0x43f   : > { %4158 = vmatprep.subr.bf16.mxu1 %v4653_v0  ;;  %4151 = vmatpush3.bf16.msra.mxu0 %v4476_v50  ;;  %v2939_v50 = vld [vmem:[#allocation2 + $0x10] sm:$0x1] }
 0x440   : > { %4152 = vmatprep.subr.bf16.mxu0 %v4653_v0 }
 0x441   : > { %4135 = vmatmul.mubr.bf16.vlgmr.msra.gmra.mrb[36].mxu1 %v2489_v37  ;;  %v4479_v37 = vld [vmem:[#allocation7 + $0x5c0] sm:$0xff]  }
 0x442   : > { %4174 = vmatprep.mubr.msk.bf16.mxu1 %vm4655_vm0, %v4653_v0  ;;  %4159 = vmatpush3.bf16.msra.mxu1 %v4463_v38  ;;  %v4482_v38 = vld [vmem:[#allocation7 + $0x588] sm:$0xff]  }
 0x443   : > { %4160 = vmatprep.subr.bf16.mxu1 %v4653_v0  ;;  %4153 = vmatpush3.bf16.msra.mxu0 %v4478_v52  ;;  %v4494_v52 = vld [vmem:[#allocation7 + $0x5b8] sm:$0xff]  }
 0x444   : > { %4178 = vmatprep.subr.bf16.mxu0 %v4653_v0 }
 0x446   : > { %4161 = vmatpush3.bf16.msra.mxu1 %v4465_v41  ;;  %v4484_v41 = vld [vmem:[#allocation7 + $0x590] sm:$0xff]  }
 0x447   : > { %4162 = vmatprep.subr.bf16.mxu1 %v4653_v0 }
 0x44a   : > { %4163 = vmatpush3.bf16.msra.mxu1 %v4467_v43  ;;  %v4486_v43 = vld [vmem:[#allocation7 + $0x598] sm:$0xff]  }
 0x44b   : > { %4164 = vmatprep.subr.bf16.mxu1 %v4653_v0 }
 0x44e   : > { %4165 = vmatpush3.bf16.msra.mxu1 %v4469_v45  ;;  %v4488_v45 = vld [vmem:[#allocation7 + $0x5a0] sm:$0xff]  }
 0x44f   : > { %4166 = vmatprep.subr.bf16.mxu1 %v4653_v0 }
 0x452   : > { %4167 = vmatpush3.bf16.msra.mxu1 %v4471_v47  ;;  %v4490_v47 = vld [vmem:[#allocation7 + $0x5a8] sm:$0xff]  }
 0x453   : > { %4168 = vmatprep.subr.bf16.mxu1 %v4653_v0 }
 0x456   : > { %4169 = vmatpush3.bf16.msra.mxu1 %v4473_v49  ;;  %v4492_v49 = vld [vmem:[#allocation7 + $0x5b0] sm:$0xff]  }
 0x457   : > { %4170 = vmatprep.subr.bf16.mxu1 %v4653_v0 }
 0x45a   : > { %4171 = vmatpush3.bf16.msra.mxu1 %v4475_v51  ;;  %v4491_v51 = vld [vmem:[#allocation7 + $0x5f0] sm:$0xff]  }
 0x45b   : > { %4172 = vmatprep.subr.bf16.mxu1 %v4653_v0 }
 0x45e   : > { %4173 = vmatpush3.bf16.msra.mxu1 %v4477_v53 }
 0x45f   : > { %4198 = vmatprep.subr.bf16.mxu1 %v4653_v0 }
 0x4d4   : > { %v2134_v54 = vpop.f32.mrb[28].mxu1 }
 0x4d5   : > { %v4056_v55 = vpop.f32.mrb[29].mxu1 }
 0x4d6   : > { %v2137_v56 = vpop.f32.mrb[30].mxu1  ;;  %v4493_v55 = vld [vmem:[#allocation7 + $0x5f8] sm:$0xff]  }
 0x4d7   : > { %v4057_v57 = vpop.f32.mrb[31].mxu1 }
 0x4d8   : > { %v2229_v58 = vpop.f32.mrb[32].mxu0 }
 0x4d9   : > { %v4076_v59 = vpop.f32.mrb[33].mxu0  ;;  %v2230_v60 = vadd.f32 %v2229_v58, %v2134_v54  ;;  %v2965_v54 = vshll.u32 %v2939_v50, 16 }
 0x4da   : > { %v2232_v61 = vpop.f32.mrb[34].mxu0  ;;  %v4496_v59 = vld [vmem:[#allocation7 + $0x608] sm:$0xff]  }
 0x4db   : > { %v4077_v62 = vpop.f32.mrb[35].mxu0  ;;  %v2233_v63 = vadd.f32 %v2232_v61, %v2137_v56  ;;  %v4495_v56 = vld [vmem:[#allocation7 + $0x600] sm:$0xff]   ;;  %v2967_v58 = vrot.slane %v2965_v54, 1  ;;  %v4497_v61 = vld [vmem:[#allocation7 + $0x610] sm:$0xff]  }
 0x4dc   : > { %v4498_v62 = vld [vmem:[#allocation7 + $0x618] sm:$0xff]  }
 0x4f4   : > { %v2335_v1 = vpop.f32.mrb[32].mxu1 }
 0x4f5   : > { %v2342_v2 = vadd.f32 %v2335_v1, %v2230_v60  ;;  %v4096_v3 = vpop.f32.mrb[33].mxu1  ;;  %v4500_v1 = vld [vmem:[#allocation7 + $0x628] sm:$0xff]  }
 0x4f6   : > { %v2338_v4 = vpop.f32.mrb[34].mxu1 }
 0x4f7   : > { %v2343_v5 = vadd.f32 %v2338_v4, %v2233_v63  ;;  %v4097_v6 = vpop.f32.mrb[35].mxu1  ;;  %v4499_v63 = vld [vmem:[#allocation7 + $0x620] sm:$0xff]   ;;  %v4502_v4 = vld [vmem:[#allocation7 + $0x638] sm:$0xff]  }
 0x4f8   : > { %v2458_v7 = vpop.f32.mrb[36].mxu0  ;;  %v3082_v6 = vrot.slane %v2939_v50, 1 }
 0x4f9   : > { %v4116_v8 = vpop.f32.mrb[37].mxu0  ;;  %v2465_v9 = vadd.f32 %v2458_v7, %v2342_v2  ;;  %v4501_v2 = vld [vmem:[#allocation7 + $0x630] sm:$0xff]  }
 0x4fa   : > { %v2461_v10 = vpop.f32.mrb[38].mxu0 }
 0x4fb   : > { %v4117_v11 = vpop.f32.mrb[39].mxu0  ;;  %v2466_v12 = vadd.f32 %v2461_v10, %v2343_v5 }
 0x514   : > { %v2573_v13 = vpop.f32.mrb[36].mxu1 }
 0x515   : > { %v2580_v15 = vadd.f32 %v2573_v13, %v2465_v9  ;;  %v4136_v16 = vpop.f32.mrb[37].mxu1 }
 0x516   : > { %v2576_v17 = vpop.f32.mrb[38].mxu1 }
 0x517   : > { %v2590_v18 = vadd.f32 %v3463_v14, %v2580_v15  ;;  %v2581_v19 = vadd.f32 %v2576_v17, %v2466_v12  ;;  %v4137_v20 = vpop.f32.mrb[39].mxu1 }
 0x519   : > { %v2591_v21 = vadd.f32 %v3463_v14, %v2581_v19  ;;  %4515 = vtanh.f32 %v2590_v18 }
 0x51b   : > { %4517 = vtanh.f32 %v2591_v21 }
 0x523   : > { %v4516_v23 = vpop.eup %4515 }
 0x525   : > { %v4518_v24 = vpop.eup %4517 }
 0x526   : > { %v5138_v25 = vpack.c.bf16 %v4518_v24, %v4516_v23 }
 0x528   : > { %2595 = vst [vmem:[#allocation2 + $0x8] sm:$0xff] %v5138_v25  ;;  %v2638_v27 = vshrl.u32 %v5138_v25, 16  ;;  %v2641_v30 = vshll.u32 %v5138_v25, 16 }
 0x52a   : > { %v2640_v29 = vrot.slane %v2638_v27, 7  ;;  %v2962_v53 = vrot.slane %v2641_v30, 1 }
 0x52c   : > { %v2643_v31 = vor.u32 %v2641_v30, %v2640_v29  ;;  %v2963_v57 = vor.u32 %v2962_v53, %v2638_v27  ;;  %v3505_v30 = vld [vmem:[%s5236_s2 + $0x4] ss:$0 sm:$0xff] }
 0x52e   : > { %v2644_v34 = vsel %vm254_vm1, %v2636_v28, %v2643_v31  ;;  %v2968_v60 = vsel %vm580_vm3, %v2963_v57, %v2967_v58 }
 0x52f   : > { %v2597_v35 = vld [vmem:[#allocation2 + $0x8] sm:$0x7f]  ;;  %4155 = vmatmul.mubr.bf16.vlgmr.msra.gmra.mrb[40].mxu0 %v2644_v34 }
 0x530   : > { %v2738_v36 = vrot.slane %v2597_v35, 7  ;;  %4179 = vmatpush3.bf16.msra.mxu0 %v4480_v32  ;;  %4194 = vmatprep.mubr.msk.bf16.mxu0 %vm4655_vm0, %v4653_v0  ;;  %v3061_v3 = vld [vmem:[#allocation2 + $0x8] sm:$0xfe] }
 0x531   : > { %4180 = vmatprep.subr.bf16.mxu0 %v4653_v0  ;;  %v3081_v5 = vrot.slane %v3061_v3, 1 }
 0x532   : > { %v2739_v39 = vsel %vm359_vm2, %v2737_v33, %v2738_v36 }
 0x533   : > { %4175 = vmatmul.mubr.bf16.vlgmr.msra.gmra.mrb[40].mxu1 %v2739_v39  ;;  %v3083_v7 = vsel %vm705_vm4, %v3081_v5, %v3082_v6 }
 0x534   : > { %4199 = vmatpush3.bf16.msra.mxu1 %v4479_v37  ;;  %4181 = vmatpush3.bf16.msra.mxu0 %v4482_v38 }
 0x535   : > { %4200 = vmatprep.subr.bf16.mxu1 %v4653_v0  ;;  %4182 = vmatprep.subr.bf16.mxu0 %v4653_v0 }
 0x536   : > { %4214 = vmatprep.mubr.msk.bf16.mxu1 %vm4655_vm0, %v4653_v0 }
 0x538   : > { %4201 = vmatpush3.bf16.msra.mxu1 %v4481_v40  ;;  %4183 = vmatpush3.bf16.msra.mxu0 %v4484_v41 }
 0x539   : > { %4202 = vmatprep.subr.bf16.mxu1 %v4653_v0  ;;  %4184 = vmatprep.subr.bf16.mxu0 %v4653_v0 }
 0x53c   : > { %4203 = vmatpush3.bf16.msra.mxu1 %v4483_v42  ;;  %4185 = vmatpush3.bf16.msra.mxu0 %v4486_v43 }
 0x53d   : > { %4204 = vmatprep.subr.bf16.mxu1 %v4653_v0  ;;  %4186 = vmatprep.subr.bf16.mxu0 %v4653_v0 }
 0x540   : > { %4205 = vmatpush3.bf16.msra.mxu1 %v4485_v44  ;;  %4187 = vmatpush3.bf16.msra.mxu0 %v4488_v45 }
 0x541   : > { %4206 = vmatprep.subr.bf16.mxu1 %v4653_v0  ;;  %4188 = vmatprep.subr.bf16.mxu0 %v4653_v0 }
 0x544   : > { %4207 = vmatpush3.bf16.msra.mxu1 %v4487_v46  ;;  %4189 = vmatpush3.bf16.msra.mxu0 %v4490_v47 }
 0x545   : > { %4208 = vmatprep.subr.bf16.mxu1 %v4653_v0  ;;  %4190 = vmatprep.subr.bf16.mxu0 %v4653_v0 }
 0x548   : > { %4209 = vmatpush3.bf16.msra.mxu1 %v4489_v48  ;;  %4191 = vmatpush3.bf16.msra.mxu0 %v4492_v49 }
 0x549   : > { %4210 = vmatprep.subr.bf16.mxu1 %v4653_v0  ;;  %4192 = vmatprep.subr.bf16.mxu0 %v4653_v0 }
 0x54c   : > { %4211 = vmatpush3.bf16.msra.mxu1 %v4491_v51  ;;  %4193 = vmatpush3.bf16.msra.mxu0 %v4494_v52 }
 0x54d   : > { %4212 = vmatprep.subr.bf16.mxu1 %v4653_v0  ;;  %4218 = vmatprep.subr.bf16.mxu0 %v4653_v0 }
 0x54f   : > { %4195 = vmatmul.mubr.bf16.vlgmr.msra.gmra.mrb[44].mxu0 %v5138_v25 }
 0x550   : > { %4213 = vmatpush3.bf16.msra.mxu1 %v4493_v55  ;;  %4219 = vmatpush3.bf16.msra.mxu0 %v4495_v56 }
 0x551   : > { %4220 = vmatprep.subr.bf16.mxu0 %v4653_v0  ;;  %4234 = vmatprep.mubr.msk.bf16.mxu0 %vm4655_vm0, %v4653_v0 }
 0x553   : > { %4215 = vmatmul.mubr.bf16.vlgmr.msra.gmra.mrb[44].mxu1 %v2968_v60 }
 0x554   : > { %4221 = vmatpush3.bf16.msra.mxu0 %v4496_v59 }
 0x555   : > { %4222 = vmatprep.subr.bf16.mxu0 %v4653_v0 }
 0x558   : > { %4223 = vmatpush3.bf16.msra.mxu0 %v4497_v61 }
 0x559   : > { %4224 = vmatprep.subr.bf16.mxu0 %v4653_v0 }
 0x55c   : > { %4225 = vmatpush3.bf16.msra.mxu0 %v4498_v62 }
 0x55d   : > { %4226 = vmatprep.subr.bf16.mxu0 %v4653_v0 }
 0x560   : > { %4227 = vmatpush3.bf16.msra.mxu0 %v4499_v63 }
 0x561   : > { %4228 = vmatprep.subr.bf16.mxu0 %v4653_v0 }
 0x564   : > { %4229 = vmatpush3.bf16.msra.mxu0 %v4500_v1 }
 0x565   : > { %4230 = vmatprep.subr.bf16.mxu0 %v4653_v0 }
 0x568   : > { %4231 = vmatpush3.bf16.msra.mxu0 %v4501_v2 }
 0x569   : > { %4232 = vmatprep.subr.bf16.mxu0 %v4653_v0 }
 0x56c   : > { %4233 = vmatpush3.bf16.msra.mxu0 %v4502_v4 }
 0x56f   : > { %4235 = vmatmul.mubr.bf16.vlgmr.msra.gmra.mrb[48].mxu0 %v3083_v7 }
 0x602   : > { %v2728_v8 = vpop.f32.mrb[40].mxu0 }
 0x603   : > { %v4156_v9 = vpop.f32.mrb[41].mxu0 }
 0x604   : > { %v2731_v10 = vpop.f32.mrb[42].mxu0 }
 0x605   : > { %v4157_v11 = vpop.f32.mrb[43].mxu0 }
 0x606   : > { %v2823_v12 = vpop.f32.mrb[40].mxu1 }
 0x607   : > { %v4176_v13 = vpop.f32.mrb[41].mxu1  ;;  %v2824_v14 = vadd.f32 %v2823_v12, %v2728_v8 }
 0x608   : > { %v2826_v15 = vpop.f32.mrb[42].mxu1 }
 0x609   : > { %v4177_v16 = vpop.f32.mrb[43].mxu1  ;;  %v2827_v17 = vadd.f32 %v2826_v15, %v2731_v10 }
 0x622   : > { %v2929_v18 = vpop.f32.mrb[44].mxu0 }
 0x623   : > { %v2936_v19 = vadd.f32 %v2929_v18, %v2824_v14  ;;  %v4196_v0 = vpop.f32.mrb[45].mxu0 }
 0x624   : > { %v2932_v20 = vpop.f32.mrb[46].mxu0 }
 0x625   : > { %v2937_v21 = vadd.f32 %v2932_v20, %v2827_v17  ;;  %v4197_v22 = vpop.f32.mrb[47].mxu0 }
 0x626   : > { %v3052_v23 = vpop.f32.mrb[44].mxu1 }
 0x627   : > { %v4216_v24 = vpop.f32.mrb[45].mxu1  ;;  %v3059_v25 = vadd.f32 %v3052_v23, %v2936_v19 }
 0x628   : > { %v3055_v26 = vpop.f32.mrb[46].mxu1 }
 0x629   : > { %v4217_v27 = vpop.f32.mrb[47].mxu1  ;;  %v3060_v28 = vadd.f32 %v3055_v26, %v2937_v21 }
 0x642   : > { %v3167_v29 = vpop.f32.mrb[48].mxu0 }
 0x643   : > { %v3174_v31 = vadd.f32 %v3167_v29, %v3059_v25  ;;  %v4236_v32 = vpop.f32.mrb[49].mxu0 }
 0x644   : > { %v3170_v33 = vpop.f32.mrb[50].mxu0 }
 0x645   : > { %v3184_v34 = vadd.f32 %v3505_v30, %v3174_v31  ;;  %v3175_v35 = vadd.f32 %v3170_v33, %v3060_v28  ;;  %v4237_v36 = vpop.f32.mrb[51].mxu0 }
 0x647   : > { %3186 = vst [vmem:[%s203_s29] sm:$0xff] %v3184_v34  ;;  %v3185_v37 = vadd.f32 %v3505_v30, %v3175_v35 }
 0x649   : > { %3187 = vst [vmem:[%s203_s29 + $0x8] sm:$0xff] %v3185_v37 }
 0x64a   : > { %4590 = shalt.err (!%p4587_p7)
}
 0x64b   : > { %s4591_s4 = scalar_lea.hbm %s5190_s11, 256  ;;  %s4595_s5 = scalar_lea.hbm %s5237_s3, 512 }
 0x64c   : > { %p4592_p9 = scmp.ne.s32.totalorder %s5190_s11, %s4591_s4  ;;  %p4596_p5 = scmp.lt.u32.totalorder %s5190_s11, %s5237_s3 }
 0x64d   : > { %p4597_p11 = scmp.lt.u32.totalorder %s4595_s5, %s4591_s4  ;;  %p4599_p4 = scmp.lt.u32.totalorder %s4591_s4, %s5190_s11 }
 0x64e   : > { %p4593_p1 = pnand %p4592_p9, %p4773_p12 }
 0x64f   : > { %p4598_p2 = por %p4597_p11, %p4596_p5 }
 0x650   : > { %p4594_p0 = pneg %p4593_p1 }
 0x651   : > { %p4600_p6 = por %p4599_p4, %p4598_p2 }
 0x653   : > { %p4601_p8 = pnand %p4600_p6, %p4594_p0 }
 0x655   : > { %4604 = shalt.err (!%p4601_p8)
}
 0x656   : > { %s4657_s23 = smov 128   ;;  %s4658_s29 = smov 8  }
 0x657   : > { %4244 = dma.vmem_to_hbm [thread:$0]  (%p4773_p12), %s5185_s30, 256, %s5190_s11, %s3189_s18, %s4657_s23, %s4657_s23, %s4658_s29  }
 0x658 PF: > { %s3217_s22 = sand.u32 1, %s4635_s12   ;;  %p5252_p10 = scmp.ne.s32.totalorder %s5242_s19, 0 }
 0x659   : > { %p5253_p13 = scmp.ge.s32.totalorder %s4647_s15, 2  ;;  %s3218_s7 = scalar_lea.sflag [#allocation6], %s3217_s22 }
 0x65b   : > { %p4255_p3 = pnand %p5253_p13, %p5252_p10 }
 0x65d   : > { %4630 = dma.done.wait (!%p4255_p3), %s3218_s7, 256  }
 0x65e   : > { %4632 = vsyncadd (!%p4255_p3), %s3218_s7, 4294967040  ;;  %p17_p7 = scmp.ge.s32.totalorder %s4735_s24, 4   ;;  %s5254_s12 = smov %s4639_s13 }
 0x65f   : > { %s5255_s13 = smov %s4643_s14  ;;  %s5256_s14 = smov %s4769_s17 }
 0x660   : > { %s5257_s15 = smov %s4735_s24  ;;  %19 = sbr.rel (!%p17_p7) target bundleno = 6 (0x6), region = 109 }
 0x667   :  { %3223 = vsyncpa [#allocation5], 1 }
 0x668   :  { %3225 = vsyncpa [#allocation5 + $0x1], 1 }
 0x669   :  { %3226 = vsyncpa [#allocation8], 1 }
 0x66a   :  { %3227 = vsyncpa [#allocation6], 1 }
 0x66b   :  { %3229 = vsyncpa [#allocation6 + $0x1], 1 }

</bundles_post_ra>
